<compile_context>
chip_gen: v7x
topology: tpu7x:2x2x1
jax: 0.10.0
libtpu: 0.0.40
codegen_flags: <defaults>
</compile_context>

<pallas_src>
import functools

import jax
import jax.numpy as jnp
from jax import lax
from jax.experimental import pallas as pl
from jax.experimental.pallas import tpu as pltpu


def _lstm_chunk_kernel(x_ref, wih_ref, whh_ref, b_ref, h0_ref, c0_ref,
                       out_ref, cN_ref,
                       h_sc, c_sc, gx_sc, *, chunk_len, batch, unroll):
    """One grid step == one chunk of `chunk_len` timesteps of the recurrence."""
    chunk = pl.program_id(0)
    Tc, B = chunk_len, batch
    F = x_ref.shape[-1]
    H = h_sc.shape[-1]

    @pl.when(chunk == 0)
    def _():
        h_sc[...] = h0_ref[0]
        c_sc[...] = c0_ref[0]

    # ---- prologue: hoist the input projection out of the serial recurrence ----
    # One MXU matmul per gate over ALL timesteps of the chunk (gate order [i,f,g,o]).
    # Bias is folded here (b_ih + b_hh), so the inner loop has no bias adds.
    x2d = x_ref[...].reshape(Tc * B, F)
    for k in range(4):
        gx_sc[k] = (jnp.dot(x2d, wih_ref[k], preferred_element_type=jnp.float32)
                    + b_ref[k]).reshape(Tc, B, H)

    # Recurrent weights: load once per chunk, loop-invariant in vregs.
    w_i = whh_ref[0]
    w_f = whh_ref[1]
    w_g = whh_ref[2]
    w_o = whh_ref[3]

    def step(t, carry):
        h, c = carry
        # Four independent MXU pushes per step (no inter-gate dependency);
        # gate nonlinearities go to the EUP, elementwise update to the VPU.
        gi = gx_sc[0, t] + jnp.dot(h, w_i, preferred_element_type=jnp.float32)
        gf = gx_sc[1, t] + jnp.dot(h, w_f, preferred_element_type=jnp.float32)
        gg = gx_sc[2, t] + jnp.dot(h, w_g, preferred_element_type=jnp.float32)
        go = gx_sc[3, t] + jnp.dot(h, w_o, preferred_element_type=jnp.float32)
        i_gate = jax.nn.sigmoid(gi)
        f_gate = jax.nn.sigmoid(gf)
        g_gate = jnp.tanh(gg)
        o_gate = jax.nn.sigmoid(go)
        c_new = f_gate * c + i_gate * g_gate
        h_new = o_gate * jnp.tanh(c_new)
        out_ref[t] = h_new                      # stays in VMEM; one DMA per chunk
        return h_new, c_new

    h_fin, c_fin = lax.fori_loop(0, Tc, step, (h_sc[...], c_sc[...]),
                                 unroll=unroll)

    # carry state to the next chunk (one vst per chunk, not per step)
    h_sc[...] = h_fin
    c_sc[...] = c_fin
    cN_ref[0] = c_fin        # constant-index output block: written back once


def _pick_time_chunk(T, B, F, H, vmem_budget_bytes=8 * 1024 * 1024):
    """Largest divisor of T whose chunk-dependent VMEM footprint fits the budget."""
    def footprint(Tc):
        xb = 2 * Tc * B * F * 4          # x block, double-buffered
        ob = 2 * Tc * B * H * 4          # out block, double-buffered
        gx = 4 * Tc * B * H * 4          # hoisted input projection scratch
        return xb + ob + gx
    best = 1
    for d in range(1, T + 1):
        if T % d == 0 and footprint(d) <= vmem_budget_bytes:
            best = d
    return best


def base_rnn_forward(x_t, hidden, params, *, time_chunk=None):
    """LSTM forward identical to PyTorch nn.LSTM (1 layer), batch_first=False.

    x_t:    (T, B, F) float32
    hidden: (h0, c0) each (1, B, H) float32
    params: dict with w_ih (4H, F), w_hh (4H, H), b_ih (4H,), b_hh (4H,)
    """
    h0, c0 = hidden
    T, B, F = x_t.shape
    H = h0.shape[-1]

    # Pick the time-chunk length.
    if time_chunk is None:
        Tc = _pick_time_chunk(T, B, F, H)
    else:
        Tc = max(d for d in range(1, min(time_chunk, T) + 1) if T % d == 0)
    num_chunks = T // Tc

    # Bounded unroll of the serial inner loop: full for short chunks, partial
    # (8 steps) for long chunks to keep instruction memory / compile time sane.
    unroll = True if Tc <= 16 else 8

    # Layout plumbing (wrapper side): per-gate weights with the gate axis
    # leading so the kernel never slices lanes. PyTorch packs gates [i,f,g,o]
    # along the first axis of w_ih / w_hh.
    wih_g = params["w_ih"].reshape(4, H, F).transpose(0, 2, 1)    # (4, F, H)
    whh_g = params["w_hh"].reshape(4, H, H).transpose(0, 2, 1)    # (4, H, H)
    bias_g = (params["b_ih"] + params["b_hh"]).reshape(4, 1, H)   # (4, 1, H)

    kernel = functools.partial(_lstm_chunk_kernel,
                               chunk_len=Tc, batch=B, unroll=unroll)

    out, c_n = pl.pallas_call(
        kernel,
        out_shape=(
            jax.ShapeDtypeStruct((T, B, H), jnp.float32),
            jax.ShapeDtypeStruct((1, B, H), jnp.float32),
        ),
        grid_spec=pltpu.PrefetchScalarGridSpec(
            num_scalar_prefetch=0,
            grid=(num_chunks,),
            in_specs=[
                pl.BlockSpec((Tc, B, F), lambda c: (c, 0, 0)),    # x chunk
                pl.BlockSpec((4, F, H), lambda c: (0, 0, 0)),     # W_ih^T per gate
                pl.BlockSpec((4, H, H), lambda c: (0, 0, 0)),     # W_hh^T per gate
                pl.BlockSpec((4, 1, H), lambda c: (0, 0, 0)),     # folded bias per gate
                pl.BlockSpec((1, B, H), lambda c: (0, 0, 0)),     # h0
                pl.BlockSpec((1, B, H), lambda c: (0, 0, 0)),     # c0
            ],
            out_specs=[
                pl.BlockSpec((Tc, B, H), lambda c: (c, 0, 0)),    # output chunk
                pl.BlockSpec((1, B, H), lambda c: (0, 0, 0)),     # c_n
            ],
            scratch_shapes=[
                pltpu.VMEM((B, H), jnp.float32),                  # h carry (across chunks)
                pltpu.VMEM((B, H), jnp.float32),                  # c carry (across chunks)
                pltpu.VMEM((4, Tc, B, H), jnp.float32),           # hoisted input projection
            ],
        ),
        compiler_params=pltpu.CompilerParams(
            dimension_semantics=("arbitrary",),                   # time is sequential
        ),
    )(x_t, wih_g, whh_g, bias_g, h0, c0)

    h_n = out[T - 1:T]                                            # h_n == last output
    return out, (h_n, c_n)


def init_lstm_params(key, n_features, hidden_dim):
    """Deterministic init matching PyTorch LSTM param shapes: U(-1/sqrt(H), 1/sqrt(H))."""
    k = 1.0 / jnp.sqrt(jnp.float32(hidden_dim))
    k1, k2, k3, k4 = jax.random.split(key, 4)
    return {
        "w_ih": jax.random.uniform(k1, (4 * hidden_dim, n_features), jnp.float32, -k, k),
        "w_hh": jax.random.uniform(k2, (4 * hidden_dim, hidden_dim), jnp.float32, -k, k),
        "b_ih": jax.random.uniform(k3, (4 * hidden_dim,), jnp.float32, -k, k),
        "b_hh": jax.random.uniform(k4, (4 * hidden_dim,), jnp.float32, -k, k),
    }


def _reference_lstm(x_t, hidden, params):
    """Pure-JAX reference (same math) for a sanity check."""
    h, c = hidden[0][0], hidden[1][0]
    H = h.shape[-1]
    wih_T, whh_T = params["w_ih"].T, params["w_hh"].T
    b = params["b_ih"] + params["b_hh"]
    outs = []
    for t in range(x_t.shape[0]):
        g = x_t[t] @ wih_T + h @ whh_T + b
        i = jax.nn.sigmoid(g[:, 0:H])
        f = jax.nn.sigmoid(g[:, H:2 * H])
        gg = jnp.tanh(g[:, 2 * H:3 * H])
        o = jax.nn.sigmoid(g[:, 3 * H:4 * H])
        c = f * c + i * gg
        h = o * jnp.tanh(c)
        outs.append(h)
    return jnp.stack(outs, 0), (h[None], c[None])


if __name__ == "__main__":
    # B is a multiple of 8 sublanes; 4H = 128 lanes (per-gate weight tiles are
    # (F|H, 32)-wide but the combined weight arrays are lane-friendly).
    T, B, N_FEATURES, HIDDEN_DIM = 8, 8, 8, 32

    key = jax.random.PRNGKey(0)
    kx, kh, kc, kp = jax.random.split(key, 4)

    x_t = jax.random.normal(kx, (T, B, N_FEATURES), jnp.float32)
    h0 = jax.random.normal(kh, (1, B, HIDDEN_DIM), jnp.float32)
    c0 = jax.random.normal(kc, (1, B, HIDDEN_DIM), jnp.float32)
    params = init_lstm_params(kp, N_FEATURES, HIDDEN_DIM)

    out, (h_n, c_n) = base_rnn_forward(x_t, (h0, c0), params)
    jax.block_until_ready((out, h_n, c_n))

    # correctness check vs. pure-JAX reference
    ref_out, (ref_h, ref_c) = _reference_lstm(x_t, (h0, c0), params)
    assert jnp.allclose(out, ref_out, atol=2e-5), "output mismatch"
    assert jnp.allclose(h_n, ref_h, atol=2e-5), "h_n mismatch"
    assert jnp.allclose(c_n, ref_c, atol=2e-5), "c_n mismatch"

    print("KERNEL_OK")
</pallas_src>

<mosaic_0001>
module attributes {stable_mosaic.version = 11 : i64} {
  func.func @_lstm_chunk_kernel(%arg0: i32, %arg1: memref<8x8x8xf32, #tpu.memory_space<vmem>>, %arg2: memref<4x8x32xf32, #tpu.memory_space<vmem>>, %arg3: memref<4x32x32xf32, #tpu.memory_space<vmem>>, %arg4: memref<4x1x32xf32, #tpu.memory_space<vmem>>, %arg5: memref<1x8x32xf32, #tpu.memory_space<vmem>>, %arg6: memref<1x8x32xf32, #tpu.memory_space<vmem>>, %arg7: memref<8x8x32xf32, #tpu.memory_space<vmem>>, %arg8: memref<1x8x32xf32, #tpu.memory_space<vmem>>, %arg9: memref<8x32xf32, #tpu.memory_space<vmem>>, %arg10: memref<8x32xf32, #tpu.memory_space<vmem>>, %arg11: memref<4x8x8x32xf32, #tpu.memory_space<vmem>>) attributes {dimension_semantics = [#tpu.dimension_semantics<arbitrary>], iteration_bounds = array<i64: 1>, scalar_prefetch = 0 : i64, scratch_operands = 3 : i64, tpu.core_type = #tpu.core_type<tc>, window_params = [{transform_indices = @transform_0, window_bounds = array<i64: 8, 8, 8>}, {pipeline_mode = #tpu.pipeline_mode<synchronous>, transform_indices = @transform_1, window_bounds = array<i64: 4, 8, 32>}, {pipeline_mode = #tpu.pipeline_mode<synchronous>, transform_indices = @transform_2, window_bounds = array<i64: 4, 32, 32>}, {pipeline_mode = #tpu.pipeline_mode<synchronous>, transform_indices = @transform_3, window_bounds = array<i64: 4, 1, 32>}, {pipeline_mode = #tpu.pipeline_mode<synchronous>, transform_indices = @transform_4, window_bounds = array<i64: 1, 8, 32>}, {pipeline_mode = #tpu.pipeline_mode<synchronous>, transform_indices = @transform_5, window_bounds = array<i64: 1, 8, 32>}, {transform_indices = @transform_6, window_bounds = array<i64: 8, 8, 32>}, {pipeline_mode = #tpu.pipeline_mode<synchronous>, transform_indices = @transform_7, window_bounds = array<i64: 1, 8, 32>}]} {
    %c0_i32 = arith.constant 0 : i32
    %0 = arith.cmpi eq, %arg0, %c0_i32 : i32
    %1 = arith.extui %0 : i1 to i32
    %c0_i32_0 = arith.constant 0 : i32
    %2 = arith.cmpi ne, %1, %c0_i32_0 : i32
    scf.if %2 {
      %c0_235 = arith.constant 0 : index
      %c0_236 = arith.constant 0 : index
      %c0_237 = arith.constant 0 : index
      %424 = vector.load %arg5[%c0_235, %c0_236, %c0_237] : memref<1x8x32xf32, #tpu.memory_space<vmem>>, vector<1x8x32xf32>
      %425 = vector.shape_cast %424 : vector<1x8x32xf32> to vector<8x32xf32>
      %c0_238 = arith.constant 0 : index
      %c0_239 = arith.constant 0 : index
      %426 = vector.load %arg9[%c0_238, %c0_239] : memref<8x32xf32, #tpu.memory_space<vmem>>, vector<8x32xf32>
      tpu.vector_store %arg9[%c0_238, %c0_239], %425 {strides = array<i32>} : memref<8x32xf32, #tpu.memory_space<vmem>>, vector<8x32xf32>,
      %c0_240 = arith.constant 0 : index
      %c0_241 = arith.constant 0 : index
      %c0_242 = arith.constant 0 : index
      %427 = vector.load %arg6[%c0_240, %c0_241, %c0_242] : memref<1x8x32xf32, #tpu.memory_space<vmem>>, vector<1x8x32xf32>
      %428 = vector.shape_cast %427 : vector<1x8x32xf32> to vector<8x32xf32>
      %c0_243 = arith.constant 0 : index
      %c0_244 = arith.constant 0 : index
      %429 = vector.load %arg10[%c0_243, %c0_244] : memref<8x32xf32, #tpu.memory_space<vmem>>, vector<8x32xf32>
      tpu.vector_store %arg10[%c0_243, %c0_244], %428 {strides = array<i32>} : memref<8x32xf32, #tpu.memory_space<vmem>>, vector<8x32xf32>,
    } else {
    }
    %c0 = arith.constant 0 : index
    %c0_1 = arith.constant 0 : index
    %c0_2 = arith.constant 0 : index
    %3 = vector.load %arg1[%c0, %c0_1, %c0_2] : memref<8x8x8xf32, #tpu.memory_space<vmem>>, vector<8x8x8xf32>
    %4 = vector.shape_cast %3 : vector<8x8x8xf32> to vector<64x8xf32>
    %c0_3 = arith.constant 0 : index
    %c0_4 = arith.constant 0 : index
    %c0_5 = arith.constant 0 : index
    %5 = vector.load %arg2[%c0_3, %c0_4, %c0_5] : memref<4x8x32xf32, #tpu.memory_space<vmem>>, vector<1x8x32xf32>
    %6 = vector.shape_cast %5 : vector<1x8x32xf32> to vector<8x32xf32>
    %cst = arith.constant dense<0.000000e+00> : vector<64x32xf32>
    %7 = tpu.matmul %4, %6, %cst {dimension_numbers = #tpu.dot_dimension_numbers<[1], [0], [0], [1], [0, 0, 1, 1], [], []>} : vector<64x8xf32>, vector<8x32xf32>, vector<64x32xf32> -> vector<64x32xf32>
    %c0_6 = arith.constant 0 : index
    %c0_7 = arith.constant 0 : index
    %c0_8 = arith.constant 0 : index
    %8 = vector.load %arg4[%c0_6, %c0_7, %c0_8] : memref<4x1x32xf32, #tpu.memory_space<vmem>>, vector<1x1x32xf32>
    %9 = vector.shape_cast %8 : vector<1x1x32xf32> to vector<1x32xf32>
    %10 = vector.broadcast %9 : vector<1x32xf32> to vector<64x32xf32>
    %11 = arith.addf %7, %10 : vector<64x32xf32>
    %12 = vector.shape_cast %11 : vector<64x32xf32> to vector<8x8x32xf32>
    %c0_9 = arith.constant 0 : index
    %c0_10 = arith.constant 0 : index
    %c0_11 = arith.constant 0 : index
    %c0_12 = arith.constant 0 : index
    %13 = vector.load %arg11[%c0_9, %c0_10, %c0_11, %c0_12] : memref<4x8x8x32xf32, #tpu.memory_space<vmem>>, vector<1x8x8x32xf32>
    %14 = vector.shape_cast %13 : vector<1x8x8x32xf32> to vector<8x8x32xf32>
    %15 = vector.shape_cast %12 : vector<8x8x32xf32> to vector<1x8x8x32xf32>
    tpu.vector_store %arg11[%c0_9, %c0_10, %c0_11, %c0_12], %15 {strides = array<i32>} : memref<4x8x8x32xf32, #tpu.memory_space<vmem>>, vector<1x8x8x32xf32>,
    %c1 = arith.constant 1 : index
    %c0_13 = arith.constant 0 : index
    %c0_14 = arith.constant 0 : index
    %16 = vector.load %arg2[%c1, %c0_13, %c0_14] : memref<4x8x32xf32, #tpu.memory_space<vmem>>, vector<1x8x32xf32>
    %17 = vector.shape_cast %16 : vector<1x8x32xf32> to vector<8x32xf32>
    %cst_15 = arith.constant dense<0.000000e+00> : vector<64x32xf32>
    %18 = tpu.matmul %4, %17, %cst_15 {dimension_numbers = #tpu.dot_dimension_numbers<[1], [0], [0], [1], [0, 0, 1, 1], [], []>} : vector<64x8xf32>, vector<8x32xf32>, vector<64x32xf32> -> vector<64x32xf32>
    %c1_16 = arith.constant 1 : index
    %c0_17 = arith.constant 0 : index
    %c0_18 = arith.constant 0 : index
    %19 = vector.load %arg4[%c1_16, %c0_17, %c0_18] : memref<4x1x32xf32, #tpu.memory_space<vmem>>, vector<1x1x32xf32>
    %20 = vector.shape_cast %19 : vector<1x1x32xf32> to vector<1x32xf32>
    %21 = vector.broadcast %20 : vector<1x32xf32> to vector<64x32xf32>
    %22 = arith.addf %18, %21 : vector<64x32xf32>
    %23 = vector.shape_cast %22 : vector<64x32xf32> to vector<8x8x32xf32>
    %c1_19 = arith.constant 1 : index
    %c0_20 = arith.constant 0 : index
    %c0_21 = arith.constant 0 : index
    %c0_22 = arith.constant 0 : index
    %24 = vector.load %arg11[%c1_19, %c0_20, %c0_21, %c0_22] : memref<4x8x8x32xf32, #tpu.memory_space<vmem>>, vector<1x8x8x32xf32>
    %25 = vector.shape_cast %24 : vector<1x8x8x32xf32> to vector<8x8x32xf32>
    %26 = vector.shape_cast %23 : vector<8x8x32xf32> to vector<1x8x8x32xf32>
    tpu.vector_store %arg11[%c1_19, %c0_20, %c0_21, %c0_22], %26 {strides = array<i32>} : memref<4x8x8x32xf32, #tpu.memory_space<vmem>>, vector<1x8x8x32xf32>,
    %c2 = arith.constant 2 : index
    %c0_23 = arith.constant 0 : index
    %c0_24 = arith.constant 0 : index
    %27 = vector.load %arg2[%c2, %c0_23, %c0_24] : memref<4x8x32xf32, #tpu.memory_space<vmem>>, vector<1x8x32xf32>
    %28 = vector.shape_cast %27 : vector<1x8x32xf32> to vector<8x32xf32>
    %cst_25 = arith.constant dense<0.000000e+00> : vector<64x32xf32>
    %29 = tpu.matmul %4, %28, %cst_25 {dimension_numbers = #tpu.dot_dimension_numbers<[1], [0], [0], [1], [0, 0, 1, 1], [], []>} : vector<64x8xf32>, vector<8x32xf32>, vector<64x32xf32> -> vector<64x32xf32>
    %c2_26 = arith.constant 2 : index
    %c0_27 = arith.constant 0 : index
    %c0_28 = arith.constant 0 : index
    %30 = vector.load %arg4[%c2_26, %c0_27, %c0_28] : memref<4x1x32xf32, #tpu.memory_space<vmem>>, vector<1x1x32xf32>
    %31 = vector.shape_cast %30 : vector<1x1x32xf32> to vector<1x32xf32>
    %32 = vector.broadcast %31 : vector<1x32xf32> to vector<64x32xf32>
    %33 = arith.addf %29, %32 : vector<64x32xf32>
    %34 = vector.shape_cast %33 : vector<64x32xf32> to vector<8x8x32xf32>
    %c2_29 = arith.constant 2 : index
    %c0_30 = arith.constant 0 : index
    %c0_31 = arith.constant 0 : index
    %c0_32 = arith.constant 0 : index
    %35 = vector.load %arg11[%c2_29, %c0_30, %c0_31, %c0_32] : memref<4x8x8x32xf32, #tpu.memory_space<vmem>>, vector<1x8x8x32xf32>
    %36 = vector.shape_cast %35 : vector<1x8x8x32xf32> to vector<8x8x32xf32>
    %37 = vector.shape_cast %34 : vector<8x8x32xf32> to vector<1x8x8x32xf32>
    tpu.vector_store %arg11[%c2_29, %c0_30, %c0_31, %c0_32], %37 {strides = array<i32>} : memref<4x8x8x32xf32, #tpu.memory_space<vmem>>, vector<1x8x8x32xf32>,
    %c3 = arith.constant 3 : index
    %c0_33 = arith.constant 0 : index
    %c0_34 = arith.constant 0 : index
    %38 = vector.load %arg2[%c3, %c0_33, %c0_34] : memref<4x8x32xf32, #tpu.memory_space<vmem>>, vector<1x8x32xf32>
    %39 = vector.shape_cast %38 : vector<1x8x32xf32> to vector<8x32xf32>
    %cst_35 = arith.constant dense<0.000000e+00> : vector<64x32xf32>
    %40 = tpu.matmul %4, %39, %cst_35 {dimension_numbers = #tpu.dot_dimension_numbers<[1], [0], [0], [1], [0, 0, 1, 1], [], []>} : vector<64x8xf32>, vector<8x32xf32>, vector<64x32xf32> -> vector<64x32xf32>
    %c3_36 = arith.constant 3 : index
    %c0_37 = arith.constant 0 : index
    %c0_38 = arith.constant 0 : index
    %41 = vector.load %arg4[%c3_36, %c0_37, %c0_38] : memref<4x1x32xf32, #tpu.memory_space<vmem>>, vector<1x1x32xf32>
    %42 = vector.shape_cast %41 : vector<1x1x32xf32> to vector<1x32xf32>
    %43 = vector.broadcast %42 : vector<1x32xf32> to vector<64x32xf32>
    %44 = arith.addf %40, %43 : vector<64x32xf32>
    %45 = vector.shape_cast %44 : vector<64x32xf32> to vector<8x8x32xf32>
    %c3_39 = arith.constant 3 : index
    %c0_40 = arith.constant 0 : index
    %c0_41 = arith.constant 0 : index
    %c0_42 = arith.constant 0 : index
    %46 = vector.load %arg11[%c3_39, %c0_40, %c0_41, %c0_42] : memref<4x8x8x32xf32, #tpu.memory_space<vmem>>, vector<1x8x8x32xf32>
    %47 = vector.shape_cast %46 : vector<1x8x8x32xf32> to vector<8x8x32xf32>
    %48 = vector.shape_cast %45 : vector<8x8x32xf32> to vector<1x8x8x32xf32>
    tpu.vector_store %arg11[%c3_39, %c0_40, %c0_41, %c0_42], %48 {strides = array<i32>} : memref<4x8x8x32xf32, #tpu.memory_space<vmem>>, vector<1x8x8x32xf32>,
    %c0_43 = arith.constant 0 : index
    %c0_44 = arith.constant 0 : index
    %c0_45 = arith.constant 0 : index
    %49 = vector.load %arg3[%c0_43, %c0_44, %c0_45] : memref<4x32x32xf32, #tpu.memory_space<vmem>>, vector<1x32x32xf32>
    %50 = vector.shape_cast %49 : vector<1x32x32xf32> to vector<32x32xf32>
    %c1_46 = arith.constant 1 : index
    %c0_47 = arith.constant 0 : index
    %c0_48 = arith.constant 0 : index
    %51 = vector.load %arg3[%c1_46, %c0_47, %c0_48] : memref<4x32x32xf32, #tpu.memory_space<vmem>>, vector<1x32x32xf32>
    %52 = vector.shape_cast %51 : vector<1x32x32xf32> to vector<32x32xf32>
    %c2_49 = arith.constant 2 : index
    %c0_50 = arith.constant 0 : index
    %c0_51 = arith.constant 0 : index
    %53 = vector.load %arg3[%c2_49, %c0_50, %c0_51] : memref<4x32x32xf32, #tpu.memory_space<vmem>>, vector<1x32x32xf32>
    %54 = vector.shape_cast %53 : vector<1x32x32xf32> to vector<32x32xf32>
    %c3_52 = arith.constant 3 : index
    %c0_53 = arith.constant 0 : index
    %c0_54 = arith.constant 0 : index
    %55 = vector.load %arg3[%c3_52, %c0_53, %c0_54] : memref<4x32x32xf32, #tpu.memory_space<vmem>>, vector<1x32x32xf32>
    %56 = vector.shape_cast %55 : vector<1x32x32xf32> to vector<32x32xf32>
    %c0_55 = arith.constant 0 : index
    %c0_56 = arith.constant 0 : index
    %57 = vector.load %arg9[%c0_55, %c0_56] : memref<8x32xf32, #tpu.memory_space<vmem>>, vector<8x32xf32>
    %c0_57 = arith.constant 0 : index
    %c0_58 = arith.constant 0 : index
    %58 = vector.load %arg10[%c0_57, %c0_58] : memref<8x32xf32, #tpu.memory_space<vmem>>, vector<8x32xf32>
    %c0_i32_59 = arith.constant 0 : i32
    %c0_60 = arith.constant 0 : index
    %59 = arith.index_cast %c0_i32_59 : i32 to index
    %c0_61 = arith.constant 0 : index
    %c0_62 = arith.constant 0 : index
    %60 = vector.load %arg11[%c0_60, %59, %c0_61, %c0_62] : memref<4x8x8x32xf32, #tpu.memory_space<vmem>>, vector<1x1x8x32xf32>
    %61 = vector.shape_cast %60 : vector<1x1x8x32xf32> to vector<8x32xf32>
    %cst_63 = arith.constant dense<0.000000e+00> : vector<8x32xf32>
    %62 = tpu.matmul %57, %50, %cst_63 {dimension_numbers = #tpu.dot_dimension_numbers<[1], [0], [0], [1], [0, 0, 1, 1], [], []>} : vector<8x32xf32>, vector<32x32xf32>, vector<8x32xf32> -> vector<8x32xf32>
    %63 = arith.addf %61, %62 : vector<8x32xf32>
    %c1_64 = arith.constant 1 : index
    %64 = arith.index_cast %c0_i32_59 : i32 to index
    %c0_65 = arith.constant 0 : index
    %c0_66 = arith.constant 0 : index
    %65 = vector.load %arg11[%c1_64, %64, %c0_65, %c0_66] : memref<4x8x8x32xf32, #tpu.memory_space<vmem>>, vector<1x1x8x32xf32>
    %66 = vector.shape_cast %65 : vector<1x1x8x32xf32> to vector<8x32xf32>
    %cst_67 = arith.constant dense<0.000000e+00> : vector<8x32xf32>
    %67 = tpu.matmul %57, %52, %cst_67 {dimension_numbers = #tpu.dot_dimension_numbers<[1], [0], [0], [1], [0, 0, 1, 1], [], []>} : vector<8x32xf32>, vector<32x32xf32>, vector<8x32xf32> -> vector<8x32xf32>
    %68 = arith.addf %66, %67 : vector<8x32xf32>
    %c2_68 = arith.constant 2 : index
    %69 = arith.index_cast %c0_i32_59 : i32 to index
    %c0_69 = arith.constant 0 : index
    %c0_70 = arith.constant 0 : index
    %70 = vector.load %arg11[%c2_68, %69, %c0_69, %c0_70] : memref<4x8x8x32xf32, #tpu.memory_space<vmem>>, vector<1x1x8x32xf32>
    %71 = vector.shape_cast %70 : vector<1x1x8x32xf32> to vector<8x32xf32>
    %cst_71 = arith.constant dense<0.000000e+00> : vector<8x32xf32>
    %72 = tpu.matmul %57, %54, %cst_71 {dimension_numbers = #tpu.dot_dimension_numbers<[1], [0], [0], [1], [0, 0, 1, 1], [], []>} : vector<8x32xf32>, vector<32x32xf32>, vector<8x32xf32> -> vector<8x32xf32>
    %73 = arith.addf %71, %72 : vector<8x32xf32>
    %c3_72 = arith.constant 3 : index
    %74 = arith.index_cast %c0_i32_59 : i32 to index
    %c0_73 = arith.constant 0 : index
    %c0_74 = arith.constant 0 : index
    %75 = vector.load %arg11[%c3_72, %74, %c0_73, %c0_74] : memref<4x8x8x32xf32, #tpu.memory_space<vmem>>, vector<1x1x8x32xf32>
    %76 = vector.shape_cast %75 : vector<1x1x8x32xf32> to vector<8x32xf32>
    %cst_75 = arith.constant dense<0.000000e+00> : vector<8x32xf32>
    %77 = tpu.matmul %57, %56, %cst_75 {dimension_numbers = #tpu.dot_dimension_numbers<[1], [0], [0], [1], [0, 0, 1, 1], [], []>} : vector<8x32xf32>, vector<32x32xf32>, vector<8x32xf32> -> vector<8x32xf32>
    %78 = arith.addf %76, %77 : vector<8x32xf32>
    %79 = arith.negf %63 : vector<8x32xf32>
    %80 = math.exp %79 : vector<8x32xf32>
    %cst_76 = arith.constant 1.000000e+00 : f32
    %81 = vector.broadcast %cst_76 : f32 to vector<8x32xf32>
    %82 = arith.addf %81, %80 : vector<8x32xf32>
    %83 = arith.divf %81, %82 : vector<8x32xf32>
    %84 = arith.negf %68 : vector<8x32xf32>
    %85 = math.exp %84 : vector<8x32xf32>
    %cst_77 = arith.constant 1.000000e+00 : f32
    %86 = vector.broadcast %cst_77 : f32 to vector<8x32xf32>
    %87 = arith.addf %86, %85 : vector<8x32xf32>
    %88 = arith.divf %86, %87 : vector<8x32xf32>
    %89 = math.tanh %73 : vector<8x32xf32>
    %90 = arith.negf %78 : vector<8x32xf32>
    %91 = math.exp %90 : vector<8x32xf32>
    %cst_78 = arith.constant 1.000000e+00 : f32
    %92 = vector.broadcast %cst_78 : f32 to vector<8x32xf32>
    %93 = arith.addf %92, %91 : vector<8x32xf32>
    %94 = arith.divf %92, %93 : vector<8x32xf32>
    %95 = arith.mulf %88, %58 : vector<8x32xf32>
    %96 = arith.mulf %83, %89 : vector<8x32xf32>
    %97 = arith.addf %95, %96 : vector<8x32xf32>
    %98 = math.tanh %97 : vector<8x32xf32>
    %99 = arith.mulf %94, %98 : vector<8x32xf32>
    %100 = arith.index_cast %c0_i32_59 : i32 to index
    %c0_79 = arith.constant 0 : index
    %c0_80 = arith.constant 0 : index
    %101 = vector.load %arg7[%100, %c0_79, %c0_80] : memref<8x8x32xf32, #tpu.memory_space<vmem>>, vector<1x8x32xf32>
    %102 = vector.shape_cast %101 : vector<1x8x32xf32> to vector<8x32xf32>
    %103 = vector.shape_cast %99 : vector<8x32xf32> to vector<1x8x32xf32>
    tpu.vector_store %arg7[%100, %c0_79, %c0_80], %103 {strides = array<i32>} : memref<8x8x32xf32, #tpu.memory_space<vmem>>, vector<1x8x32xf32>,
    %c1_i32 = arith.constant 1 : i32
    %c0_81 = arith.constant 0 : index
    %104 = arith.index_cast %c1_i32 : i32 to index
    %c0_82 = arith.constant 0 : index
    %c0_83 = arith.constant 0 : index
    %105 = vector.load %arg11[%c0_81, %104, %c0_82, %c0_83] : memref<4x8x8x32xf32, #tpu.memory_space<vmem>>, vector<1x1x8x32xf32>
    %106 = vector.shape_cast %105 : vector<1x1x8x32xf32> to vector<8x32xf32>
    %cst_84 = arith.constant dense<0.000000e+00> : vector<8x32xf32>
    %107 = tpu.matmul %99, %50, %cst_84 {dimension_numbers = #tpu.dot_dimension_numbers<[1], [0], [0], [1], [0, 0, 1, 1], [], []>} : vector<8x32xf32>, vector<32x32xf32>, vector<8x32xf32> -> vector<8x32xf32>
    %108 = arith.addf %106, %107 : vector<8x32xf32>
    %c1_85 = arith.constant 1 : index
    %109 = arith.index_cast %c1_i32 : i32 to index
    %c0_86 = arith.constant 0 : index
    %c0_87 = arith.constant 0 : index
    %110 = vector.load %arg11[%c1_85, %109, %c0_86, %c0_87] : memref<4x8x8x32xf32, #tpu.memory_space<vmem>>, vector<1x1x8x32xf32>
    %111 = vector.shape_cast %110 : vector<1x1x8x32xf32> to vector<8x32xf32>
    %cst_88 = arith.constant dense<0.000000e+00> : vector<8x32xf32>
    %112 = tpu.matmul %99, %52, %cst_88 {dimension_numbers = #tpu.dot_dimension_numbers<[1], [0], [0], [1], [0, 0, 1, 1], [], []>} : vector<8x32xf32>, vector<32x32xf32>, vector<8x32xf32> -> vector<8x32xf32>
    %113 = arith.addf %111, %112 : vector<8x32xf32>
    %c2_89 = arith.constant 2 : index
    %114 = arith.index_cast %c1_i32 : i32 to index
    %c0_90 = arith.constant 0 : index
    %c0_91 = arith.constant 0 : index
    %115 = vector.load %arg11[%c2_89, %114, %c0_90, %c0_91] : memref<4x8x8x32xf32, #tpu.memory_space<vmem>>, vector<1x1x8x32xf32>
    %116 = vector.shape_cast %115 : vector<1x1x8x32xf32> to vector<8x32xf32>
    %cst_92 = arith.constant dense<0.000000e+00> : vector<8x32xf32>
    %117 = tpu.matmul %99, %54, %cst_92 {dimension_numbers = #tpu.dot_dimension_numbers<[1], [0], [0], [1], [0, 0, 1, 1], [], []>} : vector<8x32xf32>, vector<32x32xf32>, vector<8x32xf32> -> vector<8x32xf32>
    %118 = arith.addf %116, %117 : vector<8x32xf32>
    %c3_93 = arith.constant 3 : index
    %119 = arith.index_cast %c1_i32 : i32 to index
    %c0_94 = arith.constant 0 : index
    %c0_95 = arith.constant 0 : index
    %120 = vector.load %arg11[%c3_93, %119, %c0_94, %c0_95] : memref<4x8x8x32xf32, #tpu.memory_space<vmem>>, vector<1x1x8x32xf32>
    %121 = vector.shape_cast %120 : vector<1x1x8x32xf32> to vector<8x32xf32>
    %cst_96 = arith.constant dense<0.000000e+00> : vector<8x32xf32>
    %122 = tpu.matmul %99, %56, %cst_96 {dimension_numbers = #tpu.dot_dimension_numbers<[1], [0], [0], [1], [0, 0, 1, 1], [], []>} : vector<8x32xf32>, vector<32x32xf32>, vector<8x32xf32> -> vector<8x32xf32>
    %123 = arith.addf %121, %122 : vector<8x32xf32>
    %124 = arith.negf %108 : vector<8x32xf32>
    %125 = math.exp %124 : vector<8x32xf32>
    %cst_97 = arith.constant 1.000000e+00 : f32
    %126 = vector.broadcast %cst_97 : f32 to vector<8x32xf32>
    %127 = arith.addf %126, %125 : vector<8x32xf32>
    %128 = arith.divf %126, %127 : vector<8x32xf32>
    %129 = arith.negf %113 : vector<8x32xf32>
    %130 = math.exp %129 : vector<8x32xf32>
    %cst_98 = arith.constant 1.000000e+00 : f32
    %131 = vector.broadcast %cst_98 : f32 to vector<8x32xf32>
    %132 = arith.addf %131, %130 : vector<8x32xf32>
    %133 = arith.divf %131, %132 : vector<8x32xf32>
    %134 = math.tanh %118 : vector<8x32xf32>
    %135 = arith.negf %123 : vector<8x32xf32>
    %136 = math.exp %135 : vector<8x32xf32>
    %cst_99 = arith.constant 1.000000e+00 : f32
    %137 = vector.broadcast %cst_99 : f32 to vector<8x32xf32>
    %138 = arith.addf %137, %136 : vector<8x32xf32>
    %139 = arith.divf %137, %138 : vector<8x32xf32>
    %140 = arith.mulf %133, %97 : vector<8x32xf32>
    %141 = arith.mulf %128, %134 : vector<8x32xf32>
    %142 = arith.addf %140, %141 : vector<8x32xf32>
    %143 = math.tanh %142 : vector<8x32xf32>
    %144 = arith.mulf %139, %143 : vector<8x32xf32>
    %145 = arith.index_cast %c1_i32 : i32 to index
    %c0_100 = arith.constant 0 : index
    %c0_101 = arith.constant 0 : index
    %146 = vector.load %arg7[%145, %c0_100, %c0_101] : memref<8x8x32xf32, #tpu.memory_space<vmem>>, vector<1x8x32xf32>
    %147 = vector.shape_cast %146 : vector<1x8x32xf32> to vector<8x32xf32>
    %148 = vector.shape_cast %144 : vector<8x32xf32> to vector<1x8x32xf32>
    tpu.vector_store %arg7[%145, %c0_100, %c0_101], %148 {strides = array<i32>} : memref<8x8x32xf32, #tpu.memory_space<vmem>>, vector<1x8x32xf32>,
    %c2_i32 = arith.constant 2 : i32
    %c0_102 = arith.constant 0 : index
    %149 = arith.index_cast %c2_i32 : i32 to index
    %c0_103 = arith.constant 0 : index
    %c0_104 = arith.constant 0 : index
    %150 = vector.load %arg11[%c0_102, %149, %c0_103, %c0_104] : memref<4x8x8x32xf32, #tpu.memory_space<vmem>>, vector<1x1x8x32xf32>
    %151 = vector.shape_cast %150 : vector<1x1x8x32xf32> to vector<8x32xf32>
    %cst_105 = arith.constant dense<0.000000e+00> : vector<8x32xf32>
    %152 = tpu.matmul %144, %50, %cst_105 {dimension_numbers = #tpu.dot_dimension_numbers<[1], [0], [0], [1], [0, 0, 1, 1], [], []>} : vector<8x32xf32>, vector<32x32xf32>, vector<8x32xf32> -> vector<8x32xf32>
    %153 = arith.addf %151, %152 : vector<8x32xf32>
    %c1_106 = arith.constant 1 : index
    %154 = arith.index_cast %c2_i32 : i32 to index
    %c0_107 = arith.constant 0 : index
    %c0_108 = arith.constant 0 : index
    %155 = vector.load %arg11[%c1_106, %154, %c0_107, %c0_108] : memref<4x8x8x32xf32, #tpu.memory_space<vmem>>, vector<1x1x8x32xf32>
    %156 = vector.shape_cast %155 : vector<1x1x8x32xf32> to vector<8x32xf32>
    %cst_109 = arith.constant dense<0.000000e+00> : vector<8x32xf32>
    %157 = tpu.matmul %144, %52, %cst_109 {dimension_numbers = #tpu.dot_dimension_numbers<[1], [0], [0], [1], [0, 0, 1, 1], [], []>} : vector<8x32xf32>, vector<32x32xf32>, vector<8x32xf32> -> vector<8x32xf32>
    %158 = arith.addf %156, %157 : vector<8x32xf32>
    %c2_110 = arith.constant 2 : index
    %159 = arith.index_cast %c2_i32 : i32 to index
    %c0_111 = arith.constant 0 : index
    %c0_112 = arith.constant 0 : index
    %160 = vector.load %arg11[%c2_110, %159, %c0_111, %c0_112] : memref<4x8x8x32xf32, #tpu.memory_space<vmem>>, vector<1x1x8x32xf32>
    %161 = vector.shape_cast %160 : vector<1x1x8x32xf32> to vector<8x32xf32>
    %cst_113 = arith.constant dense<0.000000e+00> : vector<8x32xf32>
    %162 = tpu.matmul %144, %54, %cst_113 {dimension_numbers = #tpu.dot_dimension_numbers<[1], [0], [0], [1], [0, 0, 1, 1], [], []>} : vector<8x32xf32>, vector<32x32xf32>, vector<8x32xf32> -> vector<8x32xf32>
    %163 = arith.addf %161, %162 : vector<8x32xf32>
    %c3_114 = arith.constant 3 : index
    %164 = arith.index_cast %c2_i32 : i32 to index
    %c0_115 = arith.constant 0 : index
    %c0_116 = arith.constant 0 : index
    %165 = vector.load %arg11[%c3_114, %164, %c0_115, %c0_116] : memref<4x8x8x32xf32, #tpu.memory_space<vmem>>, vector<1x1x8x32xf32>
    %166 = vector.shape_cast %165 : vector<1x1x8x32xf32> to vector<8x32xf32>
    %cst_117 = arith.constant dense<0.000000e+00> : vector<8x32xf32>
    %167 = tpu.matmul %144, %56, %cst_117 {dimension_numbers = #tpu.dot_dimension_numbers<[1], [0], [0], [1], [0, 0, 1, 1], [], []>} : vector<8x32xf32>, vector<32x32xf32>, vector<8x32xf32> -> vector<8x32xf32>
    %168 = arith.addf %166, %167 : vector<8x32xf32>
    %169 = arith.negf %153 : vector<8x32xf32>
    %170 = math.exp %169 : vector<8x32xf32>
    %cst_118 = arith.constant 1.000000e+00 : f32
    %171 = vector.broadcast %cst_118 : f32 to vector<8x32xf32>
    %172 = arith.addf %171, %170 : vector<8x32xf32>
    %173 = arith.divf %171, %172 : vector<8x32xf32>
    %174 = arith.negf %158 : vector<8x32xf32>
    %175 = math.exp %174 : vector<8x32xf32>
    %cst_119 = arith.constant 1.000000e+00 : f32
    %176 = vector.broadcast %cst_119 : f32 to vector<8x32xf32>
    %177 = arith.addf %176, %175 : vector<8x32xf32>
    %178 = arith.divf %176, %177 : vector<8x32xf32>
    %179 = math.tanh %163 : vector<8x32xf32>
    %180 = arith.negf %168 : vector<8x32xf32>
    %181 = math.exp %180 : vector<8x32xf32>
    %cst_120 = arith.constant 1.000000e+00 : f32
    %182 = vector.broadcast %cst_120 : f32 to vector<8x32xf32>
    %183 = arith.addf %182, %181 : vector<8x32xf32>
    %184 = arith.divf %182, %183 : vector<8x32xf32>
    %185 = arith.mulf %178, %142 : vector<8x32xf32>
    %186 = arith.mulf %173, %179 : vector<8x32xf32>
    %187 = arith.addf %185, %186 : vector<8x32xf32>
    %188 = math.tanh %187 : vector<8x32xf32>
    %189 = arith.mulf %184, %188 : vector<8x32xf32>
    %190 = arith.index_cast %c2_i32 : i32 to index
    %c0_121 = arith.constant 0 : index
    %c0_122 = arith.constant 0 : index
    %191 = vector.load %arg7[%190, %c0_121, %c0_122] : memref<8x8x32xf32, #tpu.memory_space<vmem>>, vector<1x8x32xf32>
    %192 = vector.shape_cast %191 : vector<1x8x32xf32> to vector<8x32xf32>
    %193 = vector.shape_cast %189 : vector<8x32xf32> to vector<1x8x32xf32>
    tpu.vector_store %arg7[%190, %c0_121, %c0_122], %193 {strides = array<i32>} : memref<8x8x32xf32, #tpu.memory_space<vmem>>, vector<1x8x32xf32>,
    %c3_i32 = arith.constant 3 : i32
    %c0_123 = arith.constant 0 : index
    %194 = arith.index_cast %c3_i32 : i32 to index
    %c0_124 = arith.constant 0 : index
    %c0_125 = arith.constant 0 : index
    %195 = vector.load %arg11[%c0_123, %194, %c0_124, %c0_125] : memref<4x8x8x32xf32, #tpu.memory_space<vmem>>, vector<1x1x8x32xf32>
    %196 = vector.shape_cast %195 : vector<1x1x8x32xf32> to vector<8x32xf32>
    %cst_126 = arith.constant dense<0.000000e+00> : vector<8x32xf32>
    %197 = tpu.matmul %189, %50, %cst_126 {dimension_numbers = #tpu.dot_dimension_numbers<[1], [0], [0], [1], [0, 0, 1, 1], [], []>} : vector<8x32xf32>, vector<32x32xf32>, vector<8x32xf32> -> vector<8x32xf32>
    %198 = arith.addf %196, %197 : vector<8x32xf32>
    %c1_127 = arith.constant 1 : index
    %199 = arith.index_cast %c3_i32 : i32 to index
    %c0_128 = arith.constant 0 : index
    %c0_129 = arith.constant 0 : index
    %200 = vector.load %arg11[%c1_127, %199, %c0_128, %c0_129] : memref<4x8x8x32xf32, #tpu.memory_space<vmem>>, vector<1x1x8x32xf32>
    %201 = vector.shape_cast %200 : vector<1x1x8x32xf32> to vector<8x32xf32>
    %cst_130 = arith.constant dense<0.000000e+00> : vector<8x32xf32>
    %202 = tpu.matmul %189, %52, %cst_130 {dimension_numbers = #tpu.dot_dimension_numbers<[1], [0], [0], [1], [0, 0, 1, 1], [], []>} : vector<8x32xf32>, vector<32x32xf32>, vector<8x32xf32> -> vector<8x32xf32>
    %203 = arith.addf %201, %202 : vector<8x32xf32>
    %c2_131 = arith.constant 2 : index
    %204 = arith.index_cast %c3_i32 : i32 to index
    %c0_132 = arith.constant 0 : index
    %c0_133 = arith.constant 0 : index
    %205 = vector.load %arg11[%c2_131, %204, %c0_132, %c0_133] : memref<4x8x8x32xf32, #tpu.memory_space<vmem>>, vector<1x1x8x32xf32>
    %206 = vector.shape_cast %205 : vector<1x1x8x32xf32> to vector<8x32xf32>
    %cst_134 = arith.constant dense<0.000000e+00> : vector<8x32xf32>
    %207 = tpu.matmul %189, %54, %cst_134 {dimension_numbers = #tpu.dot_dimension_numbers<[1], [0], [0], [1], [0, 0, 1, 1], [], []>} : vector<8x32xf32>, vector<32x32xf32>, vector<8x32xf32> -> vector<8x32xf32>
    %208 = arith.addf %206, %207 : vector<8x32xf32>
    %c3_135 = arith.constant 3 : index
    %209 = arith.index_cast %c3_i32 : i32 to index
    %c0_136 = arith.constant 0 : index
    %c0_137 = arith.constant 0 : index
    %210 = vector.load %arg11[%c3_135, %209, %c0_136, %c0_137] : memref<4x8x8x32xf32, #tpu.memory_space<vmem>>, vector<1x1x8x32xf32>
    %211 = vector.shape_cast %210 : vector<1x1x8x32xf32> to vector<8x32xf32>
    %cst_138 = arith.constant dense<0.000000e+00> : vector<8x32xf32>
    %212 = tpu.matmul %189, %56, %cst_138 {dimension_numbers = #tpu.dot_dimension_numbers<[1], [0], [0], [1], [0, 0, 1, 1], [], []>} : vector<8x32xf32>, vector<32x32xf32>, vector<8x32xf32> -> vector<8x32xf32>
    %213 = arith.addf %211, %212 : vector<8x32xf32>
    %214 = arith.negf %198 : vector<8x32xf32>
    %215 = math.exp %214 : vector<8x32xf32>
    %cst_139 = arith.constant 1.000000e+00 : f32
    %216 = vector.broadcast %cst_139 : f32 to vector<8x32xf32>
    %217 = arith.addf %216, %215 : vector<8x32xf32>
    %218 = arith.divf %216, %217 : vector<8x32xf32>
    %219 = arith.negf %203 : vector<8x32xf32>
    %220 = math.exp %219 : vector<8x32xf32>
    %cst_140 = arith.constant 1.000000e+00 : f32
    %221 = vector.broadcast %cst_140 : f32 to vector<8x32xf32>
    %222 = arith.addf %221, %220 : vector<8x32xf32>
    %223 = arith.divf %221, %222 : vector<8x32xf32>
    %224 = math.tanh %208 : vector<8x32xf32>
    %225 = arith.negf %213 : vector<8x32xf32>
    %226 = math.exp %225 : vector<8x32xf32>
    %cst_141 = arith.constant 1.000000e+00 : f32
    %227 = vector.broadcast %cst_141 : f32 to vector<8x32xf32>
    %228 = arith.addf %227, %226 : vector<8x32xf32>
    %229 = arith.divf %227, %228 : vector<8x32xf32>
    %230 = arith.mulf %223, %187 : vector<8x32xf32>
    %231 = arith.mulf %218, %224 : vector<8x32xf32>
    %232 = arith.addf %230, %231 : vector<8x32xf32>
    %233 = math.tanh %232 : vector<8x32xf32>
    %234 = arith.mulf %229, %233 : vector<8x32xf32>
    %235 = arith.index_cast %c3_i32 : i32 to index
    %c0_142 = arith.constant 0 : index
    %c0_143 = arith.constant 0 : index
    %236 = vector.load %arg7[%235, %c0_142, %c0_143] : memref<8x8x32xf32, #tpu.memory_space<vmem>>, vector<1x8x32xf32>
    %237 = vector.shape_cast %236 : vector<1x8x32xf32> to vector<8x32xf32>
    %238 = vector.shape_cast %234 : vector<8x32xf32> to vector<1x8x32xf32>
    tpu.vector_store %arg7[%235, %c0_142, %c0_143], %238 {strides = array<i32>} : memref<8x8x32xf32, #tpu.memory_space<vmem>>, vector<1x8x32xf32>,
    %c4_i32 = arith.constant 4 : i32
    %c0_144 = arith.constant 0 : index
    %239 = arith.index_cast %c4_i32 : i32 to index
    %c0_145 = arith.constant 0 : index
    %c0_146 = arith.constant 0 : index
    %240 = vector.load %arg11[%c0_144, %239, %c0_145, %c0_146] : memref<4x8x8x32xf32, #tpu.memory_space<vmem>>, vector<1x1x8x32xf32>
    %241 = vector.shape_cast %240 : vector<1x1x8x32xf32> to vector<8x32xf32>
    %cst_147 = arith.constant dense<0.000000e+00> : vector<8x32xf32>
    %242 = tpu.matmul %234, %50, %cst_147 {dimension_numbers = #tpu.dot_dimension_numbers<[1], [0], [0], [1], [0, 0, 1, 1], [], []>} : vector<8x32xf32>, vector<32x32xf32>, vector<8x32xf32> -> vector<8x32xf32>
    %243 = arith.addf %241, %242 : vector<8x32xf32>
    %c1_148 = arith.constant 1 : index
    %244 = arith.index_cast %c4_i32 : i32 to index
    %c0_149 = arith.constant 0 : index
    %c0_150 = arith.constant 0 : index
    %245 = vector.load %arg11[%c1_148, %244, %c0_149, %c0_150] : memref<4x8x8x32xf32, #tpu.memory_space<vmem>>, vector<1x1x8x32xf32>
    %246 = vector.shape_cast %245 : vector<1x1x8x32xf32> to vector<8x32xf32>
    %cst_151 = arith.constant dense<0.000000e+00> : vector<8x32xf32>
    %247 = tpu.matmul %234, %52, %cst_151 {dimension_numbers = #tpu.dot_dimension_numbers<[1], [0], [0], [1], [0, 0, 1, 1], [], []>} : vector<8x32xf32>, vector<32x32xf32>, vector<8x32xf32> -> vector<8x32xf32>
    %248 = arith.addf %246, %247 : vector<8x32xf32>
    %c2_152 = arith.constant 2 : index
    %249 = arith.index_cast %c4_i32 : i32 to index
    %c0_153 = arith.constant 0 : index
    %c0_154 = arith.constant 0 : index
    %250 = vector.load %arg11[%c2_152, %249, %c0_153, %c0_154] : memref<4x8x8x32xf32, #tpu.memory_space<vmem>>, vector<1x1x8x32xf32>
    %251 = vector.shape_cast %250 : vector<1x1x8x32xf32> to vector<8x32xf32>
    %cst_155 = arith.constant dense<0.000000e+00> : vector<8x32xf32>
    %252 = tpu.matmul %234, %54, %cst_155 {dimension_numbers = #tpu.dot_dimension_numbers<[1], [0], [0], [1], [0, 0, 1, 1], [], []>} : vector<8x32xf32>, vector<32x32xf32>, vector<8x32xf32> -> vector<8x32xf32>
    %253 = arith.addf %251, %252 : vector<8x32xf32>
    %c3_156 = arith.constant 3 : index
    %254 = arith.index_cast %c4_i32 : i32 to index
    %c0_157 = arith.constant 0 : index
    %c0_158 = arith.constant 0 : index
    %255 = vector.load %arg11[%c3_156, %254, %c0_157, %c0_158] : memref<4x8x8x32xf32, #tpu.memory_space<vmem>>, vector<1x1x8x32xf32>
    %256 = vector.shape_cast %255 : vector<1x1x8x32xf32> to vector<8x32xf32>
    %cst_159 = arith.constant dense<0.000000e+00> : vector<8x32xf32>
    %257 = tpu.matmul %234, %56, %cst_159 {dimension_numbers = #tpu.dot_dimension_numbers<[1], [0], [0], [1], [0, 0, 1, 1], [], []>} : vector<8x32xf32>, vector<32x32xf32>, vector<8x32xf32> -> vector<8x32xf32>
    %258 = arith.addf %256, %257 : vector<8x32xf32>
    %259 = arith.negf %243 : vector<8x32xf32>
    %260 = math.exp %259 : vector<8x32xf32>
    %cst_160 = arith.constant 1.000000e+00 : f32
    %261 = vector.broadcast %cst_160 : f32 to vector<8x32xf32>
    %262 = arith.addf %261, %260 : vector<8x32xf32>
    %263 = arith.divf %261, %262 : vector<8x32xf32>
    %264 = arith.negf %248 : vector<8x32xf32>
    %265 = math.exp %264 : vector<8x32xf32>
    %cst_161 = arith.constant 1.000000e+00 : f32
    %266 = vector.broadcast %cst_161 : f32 to vector<8x32xf32>
    %267 = arith.addf %266, %265 : vector<8x32xf32>
    %268 = arith.divf %266, %267 : vector<8x32xf32>
    %269 = math.tanh %253 : vector<8x32xf32>
    %270 = arith.negf %258 : vector<8x32xf32>
    %271 = math.exp %270 : vector<8x32xf32>
    %cst_162 = arith.constant 1.000000e+00 : f32
    %272 = vector.broadcast %cst_162 : f32 to vector<8x32xf32>
    %273 = arith.addf %272, %271 : vector<8x32xf32>
    %274 = arith.divf %272, %273 : vector<8x32xf32>
    %275 = arith.mulf %268, %232 : vector<8x32xf32>
    %276 = arith.mulf %263, %269 : vector<8x32xf32>
    %277 = arith.addf %275, %276 : vector<8x32xf32>
    %278 = math.tanh %277 : vector<8x32xf32>
    %279 = arith.mulf %274, %278 : vector<8x32xf32>
    %280 = arith.index_cast %c4_i32 : i32 to index
    %c0_163 = arith.constant 0 : index
    %c0_164 = arith.constant 0 : index
    %281 = vector.load %arg7[%280, %c0_163, %c0_164] : memref<8x8x32xf32, #tpu.memory_space<vmem>>, vector<1x8x32xf32>
    %282 = vector.shape_cast %281 : vector<1x8x32xf32> to vector<8x32xf32>
    %283 = vector.shape_cast %279 : vector<8x32xf32> to vector<1x8x32xf32>
    tpu.vector_store %arg7[%280, %c0_163, %c0_164], %283 {strides = array<i32>} : memref<8x8x32xf32, #tpu.memory_space<vmem>>, vector<1x8x32xf32>,
    %c5_i32 = arith.constant 5 : i32
    %c0_165 = arith.constant 0 : index
    %284 = arith.index_cast %c5_i32 : i32 to index
    %c0_166 = arith.constant 0 : index
    %c0_167 = arith.constant 0 : index
    %285 = vector.load %arg11[%c0_165, %284, %c0_166, %c0_167] : memref<4x8x8x32xf32, #tpu.memory_space<vmem>>, vector<1x1x8x32xf32>
    %286 = vector.shape_cast %285 : vector<1x1x8x32xf32> to vector<8x32xf32>
    %cst_168 = arith.constant dense<0.000000e+00> : vector<8x32xf32>
    %287 = tpu.matmul %279, %50, %cst_168 {dimension_numbers = #tpu.dot_dimension_numbers<[1], [0], [0], [1], [0, 0, 1, 1], [], []>} : vector<8x32xf32>, vector<32x32xf32>, vector<8x32xf32> -> vector<8x32xf32>
    %288 = arith.addf %286, %287 : vector<8x32xf32>
    %c1_169 = arith.constant 1 : index
    %289 = arith.index_cast %c5_i32 : i32 to index
    %c0_170 = arith.constant 0 : index
    %c0_171 = arith.constant 0 : index
    %290 = vector.load %arg11[%c1_169, %289, %c0_170, %c0_171] : memref<4x8x8x32xf32, #tpu.memory_space<vmem>>, vector<1x1x8x32xf32>
    %291 = vector.shape_cast %290 : vector<1x1x8x32xf32> to vector<8x32xf32>
    %cst_172 = arith.constant dense<0.000000e+00> : vector<8x32xf32>
    %292 = tpu.matmul %279, %52, %cst_172 {dimension_numbers = #tpu.dot_dimension_numbers<[1], [0], [0], [1], [0, 0, 1, 1], [], []>} : vector<8x32xf32>, vector<32x32xf32>, vector<8x32xf32> -> vector<8x32xf32>
    %293 = arith.addf %291, %292 : vector<8x32xf32>
    %c2_173 = arith.constant 2 : index
    %294 = arith.index_cast %c5_i32 : i32 to index
    %c0_174 = arith.constant 0 : index
    %c0_175 = arith.constant 0 : index
    %295 = vector.load %arg11[%c2_173, %294, %c0_174, %c0_175] : memref<4x8x8x32xf32, #tpu.memory_space<vmem>>, vector<1x1x8x32xf32>
    %296 = vector.shape_cast %295 : vector<1x1x8x32xf32> to vector<8x32xf32>
    %cst_176 = arith.constant dense<0.000000e+00> : vector<8x32xf32>
    %297 = tpu.matmul %279, %54, %cst_176 {dimension_numbers = #tpu.dot_dimension_numbers<[1], [0], [0], [1], [0, 0, 1, 1], [], []>} : vector<8x32xf32>, vector<32x32xf32>, vector<8x32xf32> -> vector<8x32xf32>
    %298 = arith.addf %296, %297 : vector<8x32xf32>
    %c3_177 = arith.constant 3 : index
    %299 = arith.index_cast %c5_i32 : i32 to index
    %c0_178 = arith.constant 0 : index
    %c0_179 = arith.constant 0 : index
    %300 = vector.load %arg11[%c3_177, %299, %c0_178, %c0_179] : memref<4x8x8x32xf32, #tpu.memory_space<vmem>>, vector<1x1x8x32xf32>
    %301 = vector.shape_cast %300 : vector<1x1x8x32xf32> to vector<8x32xf32>
    %cst_180 = arith.constant dense<0.000000e+00> : vector<8x32xf32>
    %302 = tpu.matmul %279, %56, %cst_180 {dimension_numbers = #tpu.dot_dimension_numbers<[1], [0], [0], [1], [0, 0, 1, 1], [], []>} : vector<8x32xf32>, vector<32x32xf32>, vector<8x32xf32> -> vector<8x32xf32>
    %303 = arith.addf %301, %302 : vector<8x32xf32>
    %304 = arith.negf %288 : vector<8x32xf32>
    %305 = math.exp %304 : vector<8x32xf32>
    %cst_181 = arith.constant 1.000000e+00 : f32
    %306 = vector.broadcast %cst_181 : f32 to vector<8x32xf32>
    %307 = arith.addf %306, %305 : vector<8x32xf32>
    %308 = arith.divf %306, %307 : vector<8x32xf32>
    %309 = arith.negf %293 : vector<8x32xf32>
    %310 = math.exp %309 : vector<8x32xf32>
    %cst_182 = arith.constant 1.000000e+00 : f32
    %311 = vector.broadcast %cst_182 : f32 to vector<8x32xf32>
    %312 = arith.addf %311, %310 : vector<8x32xf32>
    %313 = arith.divf %311, %312 : vector<8x32xf32>
    %314 = math.tanh %298 : vector<8x32xf32>
    %315 = arith.negf %303 : vector<8x32xf32>
    %316 = math.exp %315 : vector<8x32xf32>
    %cst_183 = arith.constant 1.000000e+00 : f32
    %317 = vector.broadcast %cst_183 : f32 to vector<8x32xf32>
    %318 = arith.addf %317, %316 : vector<8x32xf32>
    %319 = arith.divf %317, %318 : vector<8x32xf32>
    %320 = arith.mulf %313, %277 : vector<8x32xf32>
    %321 = arith.mulf %308, %314 : vector<8x32xf32>
    %322 = arith.addf %320, %321 : vector<8x32xf32>
    %323 = math.tanh %322 : vector<8x32xf32>
    %324 = arith.mulf %319, %323 : vector<8x32xf32>
    %325 = arith.index_cast %c5_i32 : i32 to index
    %c0_184 = arith.constant 0 : index
    %c0_185 = arith.constant 0 : index
    %326 = vector.load %arg7[%325, %c0_184, %c0_185] : memref<8x8x32xf32, #tpu.memory_space<vmem>>, vector<1x8x32xf32>
    %327 = vector.shape_cast %326 : vector<1x8x32xf32> to vector<8x32xf32>
    %328 = vector.shape_cast %324 : vector<8x32xf32> to vector<1x8x32xf32>
    tpu.vector_store %arg7[%325, %c0_184, %c0_185], %328 {strides = array<i32>} : memref<8x8x32xf32, #tpu.memory_space<vmem>>, vector<1x8x32xf32>,
    %c6_i32 = arith.constant 6 : i32
    %c0_186 = arith.constant 0 : index
    %329 = arith.index_cast %c6_i32 : i32 to index
    %c0_187 = arith.constant 0 : index
    %c0_188 = arith.constant 0 : index
    %330 = vector.load %arg11[%c0_186, %329, %c0_187, %c0_188] : memref<4x8x8x32xf32, #tpu.memory_space<vmem>>, vector<1x1x8x32xf32>
    %331 = vector.shape_cast %330 : vector<1x1x8x32xf32> to vector<8x32xf32>
    %cst_189 = arith.constant dense<0.000000e+00> : vector<8x32xf32>
    %332 = tpu.matmul %324, %50, %cst_189 {dimension_numbers = #tpu.dot_dimension_numbers<[1], [0], [0], [1], [0, 0, 1, 1], [], []>} : vector<8x32xf32>, vector<32x32xf32>, vector<8x32xf32> -> vector<8x32xf32>
    %333 = arith.addf %331, %332 : vector<8x32xf32>
    %c1_190 = arith.constant 1 : index
    %334 = arith.index_cast %c6_i32 : i32 to index
    %c0_191 = arith.constant 0 : index
    %c0_192 = arith.constant 0 : index
    %335 = vector.load %arg11[%c1_190, %334, %c0_191, %c0_192] : memref<4x8x8x32xf32, #tpu.memory_space<vmem>>, vector<1x1x8x32xf32>
    %336 = vector.shape_cast %335 : vector<1x1x8x32xf32> to vector<8x32xf32>
    %cst_193 = arith.constant dense<0.000000e+00> : vector<8x32xf32>
    %337 = tpu.matmul %324, %52, %cst_193 {dimension_numbers = #tpu.dot_dimension_numbers<[1], [0], [0], [1], [0, 0, 1, 1], [], []>} : vector<8x32xf32>, vector<32x32xf32>, vector<8x32xf32> -> vector<8x32xf32>
    %338 = arith.addf %336, %337 : vector<8x32xf32>
    %c2_194 = arith.constant 2 : index
    %339 = arith.index_cast %c6_i32 : i32 to index
    %c0_195 = arith.constant 0 : index
    %c0_196 = arith.constant 0 : index
    %340 = vector.load %arg11[%c2_194, %339, %c0_195, %c0_196] : memref<4x8x8x32xf32, #tpu.memory_space<vmem>>, vector<1x1x8x32xf32>
    %341 = vector.shape_cast %340 : vector<1x1x8x32xf32> to vector<8x32xf32>
    %cst_197 = arith.constant dense<0.000000e+00> : vector<8x32xf32>
    %342 = tpu.matmul %324, %54, %cst_197 {dimension_numbers = #tpu.dot_dimension_numbers<[1], [0], [0], [1], [0, 0, 1, 1], [], []>} : vector<8x32xf32>, vector<32x32xf32>, vector<8x32xf32> -> vector<8x32xf32>
    %343 = arith.addf %341, %342 : vector<8x32xf32>
    %c3_198 = arith.constant 3 : index
    %344 = arith.index_cast %c6_i32 : i32 to index
    %c0_199 = arith.constant 0 : index
    %c0_200 = arith.constant 0 : index
    %345 = vector.load %arg11[%c3_198, %344, %c0_199, %c0_200] : memref<4x8x8x32xf32, #tpu.memory_space<vmem>>, vector<1x1x8x32xf32>
    %346 = vector.shape_cast %345 : vector<1x1x8x32xf32> to vector<8x32xf32>
    %cst_201 = arith.constant dense<0.000000e+00> : vector<8x32xf32>
    %347 = tpu.matmul %324, %56, %cst_201 {dimension_numbers = #tpu.dot_dimension_numbers<[1], [0], [0], [1], [0, 0, 1, 1], [], []>} : vector<8x32xf32>, vector<32x32xf32>, vector<8x32xf32> -> vector<8x32xf32>
    %348 = arith.addf %346, %347 : vector<8x32xf32>
    %349 = arith.negf %333 : vector<8x32xf32>
    %350 = math.exp %349 : vector<8x32xf32>
    %cst_202 = arith.constant 1.000000e+00 : f32
    %351 = vector.broadcast %cst_202 : f32 to vector<8x32xf32>
    %352 = arith.addf %351, %350 : vector<8x32xf32>
    %353 = arith.divf %351, %352 : vector<8x32xf32>
    %354 = arith.negf %338 : vector<8x32xf32>
    %355 = math.exp %354 : vector<8x32xf32>
    %cst_203 = arith.constant 1.000000e+00 : f32
    %356 = vector.broadcast %cst_203 : f32 to vector<8x32xf32>
    %357 = arith.addf %356, %355 : vector<8x32xf32>
    %358 = arith.divf %356, %357 : vector<8x32xf32>
    %359 = math.tanh %343 : vector<8x32xf32>
    %360 = arith.negf %348 : vector<8x32xf32>
    %361 = math.exp %360 : vector<8x32xf32>
    %cst_204 = arith.constant 1.000000e+00 : f32
    %362 = vector.broadcast %cst_204 : f32 to vector<8x32xf32>
    %363 = arith.addf %362, %361 : vector<8x32xf32>
    %364 = arith.divf %362, %363 : vector<8x32xf32>
    %365 = arith.mulf %358, %322 : vector<8x32xf32>
    %366 = arith.mulf %353, %359 : vector<8x32xf32>
    %367 = arith.addf %365, %366 : vector<8x32xf32>
    %368 = math.tanh %367 : vector<8x32xf32>
    %369 = arith.mulf %364, %368 : vector<8x32xf32>
    %370 = arith.index_cast %c6_i32 : i32 to index
    %c0_205 = arith.constant 0 : index
    %c0_206 = arith.constant 0 : index
    %371 = vector.load %arg7[%370, %c0_205, %c0_206] : memref<8x8x32xf32, #tpu.memory_space<vmem>>, vector<1x8x32xf32>
    %372 = vector.shape_cast %371 : vector<1x8x32xf32> to vector<8x32xf32>
    %373 = vector.shape_cast %369 : vector<8x32xf32> to vector<1x8x32xf32>
    tpu.vector_store %arg7[%370, %c0_205, %c0_206], %373 {strides = array<i32>} : memref<8x8x32xf32, #tpu.memory_space<vmem>>, vector<1x8x32xf32>,
    %c7_i32 = arith.constant 7 : i32
    %c0_207 = arith.constant 0 : index
    %374 = arith.index_cast %c7_i32 : i32 to index
    %c0_208 = arith.constant 0 : index
    %c0_209 = arith.constant 0 : index
    %375 = vector.load %arg11[%c0_207, %374, %c0_208, %c0_209] : memref<4x8x8x32xf32, #tpu.memory_space<vmem>>, vector<1x1x8x32xf32>
    %376 = vector.shape_cast %375 : vector<1x1x8x32xf32> to vector<8x32xf32>
    %cst_210 = arith.constant dense<0.000000e+00> : vector<8x32xf32>
    %377 = tpu.matmul %369, %50, %cst_210 {dimension_numbers = #tpu.dot_dimension_numbers<[1], [0], [0], [1], [0, 0, 1, 1], [], []>} : vector<8x32xf32>, vector<32x32xf32>, vector<8x32xf32> -> vector<8x32xf32>
    %378 = arith.addf %376, %377 : vector<8x32xf32>
    %c1_211 = arith.constant 1 : index
    %379 = arith.index_cast %c7_i32 : i32 to index
    %c0_212 = arith.constant 0 : index
    %c0_213 = arith.constant 0 : index
    %380 = vector.load %arg11[%c1_211, %379, %c0_212, %c0_213] : memref<4x8x8x32xf32, #tpu.memory_space<vmem>>, vector<1x1x8x32xf32>
    %381 = vector.shape_cast %380 : vector<1x1x8x32xf32> to vector<8x32xf32>
    %cst_214 = arith.constant dense<0.000000e+00> : vector<8x32xf32>
    %382 = tpu.matmul %369, %52, %cst_214 {dimension_numbers = #tpu.dot_dimension_numbers<[1], [0], [0], [1], [0, 0, 1, 1], [], []>} : vector<8x32xf32>, vector<32x32xf32>, vector<8x32xf32> -> vector<8x32xf32>
    %383 = arith.addf %381, %382 : vector<8x32xf32>
    %c2_215 = arith.constant 2 : index
    %384 = arith.index_cast %c7_i32 : i32 to index
    %c0_216 = arith.constant 0 : index
    %c0_217 = arith.constant 0 : index
    %385 = vector.load %arg11[%c2_215, %384, %c0_216, %c0_217] : memref<4x8x8x32xf32, #tpu.memory_space<vmem>>, vector<1x1x8x32xf32>
    %386 = vector.shape_cast %385 : vector<1x1x8x32xf32> to vector<8x32xf32>
    %cst_218 = arith.constant dense<0.000000e+00> : vector<8x32xf32>
    %387 = tpu.matmul %369, %54, %cst_218 {dimension_numbers = #tpu.dot_dimension_numbers<[1], [0], [0], [1], [0, 0, 1, 1], [], []>} : vector<8x32xf32>, vector<32x32xf32>, vector<8x32xf32> -> vector<8x32xf32>
    %388 = arith.addf %386, %387 : vector<8x32xf32>
    %c3_219 = arith.constant 3 : index
    %389 = arith.index_cast %c7_i32 : i32 to index
    %c0_220 = arith.constant 0 : index
    %c0_221 = arith.constant 0 : index
    %390 = vector.load %arg11[%c3_219, %389, %c0_220, %c0_221] : memref<4x8x8x32xf32, #tpu.memory_space<vmem>>, vector<1x1x8x32xf32>
    %391 = vector.shape_cast %390 : vector<1x1x8x32xf32> to vector<8x32xf32>
    %cst_222 = arith.constant dense<0.000000e+00> : vector<8x32xf32>
    %392 = tpu.matmul %369, %56, %cst_222 {dimension_numbers = #tpu.dot_dimension_numbers<[1], [0], [0], [1], [0, 0, 1, 1], [], []>} : vector<8x32xf32>, vector<32x32xf32>, vector<8x32xf32> -> vector<8x32xf32>
    %393 = arith.addf %391, %392 : vector<8x32xf32>
    %394 = arith.negf %378 : vector<8x32xf32>
    %395 = math.exp %394 : vector<8x32xf32>
    %cst_223 = arith.constant 1.000000e+00 : f32
    %396 = vector.broadcast %cst_223 : f32 to vector<8x32xf32>
    %397 = arith.addf %396, %395 : vector<8x32xf32>
    %398 = arith.divf %396, %397 : vector<8x32xf32>
    %399 = arith.negf %383 : vector<8x32xf32>
    %400 = math.exp %399 : vector<8x32xf32>
    %cst_224 = arith.constant 1.000000e+00 : f32
    %401 = vector.broadcast %cst_224 : f32 to vector<8x32xf32>
    %402 = arith.addf %401, %400 : vector<8x32xf32>
    %403 = arith.divf %401, %402 : vector<8x32xf32>
    %404 = math.tanh %388 : vector<8x32xf32>
    %405 = arith.negf %393 : vector<8x32xf32>
    %406 = math.exp %405 : vector<8x32xf32>
    %cst_225 = arith.constant 1.000000e+00 : f32
    %407 = vector.broadcast %cst_225 : f32 to vector<8x32xf32>
    %408 = arith.addf %407, %406 : vector<8x32xf32>
    %409 = arith.divf %407, %408 : vector<8x32xf32>
    %410 = arith.mulf %403, %367 : vector<8x32xf32>
    %411 = arith.mulf %398, %404 : vector<8x32xf32>
    %412 = arith.addf %410, %411 : vector<8x32xf32>
    %413 = math.tanh %412 : vector<8x32xf32>
    %414 = arith.mulf %409, %413 : vector<8x32xf32>
    %415 = arith.index_cast %c7_i32 : i32 to index
    %c0_226 = arith.constant 0 : index
    %c0_227 = arith.constant 0 : index
    %416 = vector.load %arg7[%415, %c0_226, %c0_227] : memref<8x8x32xf32, #tpu.memory_space<vmem>>, vector<1x8x32xf32>
    %417 = vector.shape_cast %416 : vector<1x8x32xf32> to vector<8x32xf32>
    %418 = vector.shape_cast %414 : vector<8x32xf32> to vector<1x8x32xf32>
    tpu.vector_store %arg7[%415, %c0_226, %c0_227], %418 {strides = array<i32>} : memref<8x8x32xf32, #tpu.memory_space<vmem>>, vector<1x8x32xf32>,
    %c8_i32 = arith.constant 8 : i32
    %c0_228 = arith.constant 0 : index
    %c0_229 = arith.constant 0 : index
    %419 = vector.load %arg9[%c0_228, %c0_229] : memref<8x32xf32, #tpu.memory_space<vmem>>, vector<8x32xf32>
    tpu.vector_store %arg9[%c0_228, %c0_229], %414 {strides = array<i32>} : memref<8x32xf32, #tpu.memory_space<vmem>>, vector<8x32xf32>,
    %c0_230 = arith.constant 0 : index
    %c0_231 = arith.constant 0 : index
    %420 = vector.load %arg10[%c0_230, %c0_231] : memref<8x32xf32, #tpu.memory_space<vmem>>, vector<8x32xf32>
    tpu.vector_store %arg10[%c0_230, %c0_231], %412 {strides = array<i32>} : memref<8x32xf32, #tpu.memory_space<vmem>>, vector<8x32xf32>,
    %c0_232 = arith.constant 0 : index
    %c0_233 = arith.constant 0 : index
    %c0_234 = arith.constant 0 : index
    %421 = vector.load %arg8[%c0_232, %c0_233, %c0_234] : memref<1x8x32xf32, #tpu.memory_space<vmem>>, vector<1x8x32xf32>
    %422 = vector.shape_cast %421 : vector<1x8x32xf32> to vector<8x32xf32>
    %423 = vector.shape_cast %412 : vector<8x32xf32> to vector<1x8x32xf32>
    tpu.vector_store %arg8[%c0_232, %c0_233, %c0_234], %423 {strides = array<i32>} : memref<1x8x32xf32, #tpu.memory_space<vmem>>, vector<1x8x32xf32>,
    return
  }
  func.func @transform_0(%arg0: i32) -> (i32, i32, i32) {
    %c0_i32 = arith.constant 0 : i32
    %c0_i32_0 = arith.constant 0 : i32
    %c0_i32_1 = arith.constant 0 : i32
    return %arg0, %c0_i32, %c0_i32_0 : i32, i32, i32
  }
  func.func @transform_1(%arg0: i32) -> (i32, i32, i32) {
    %c0_i32 = arith.constant 0 : i32
    %c0_i32_0 = arith.constant 0 : i32
    %c0_i32_1 = arith.constant 0 : i32
    %c0_i32_2 = arith.constant 0 : i32
    return %c0_i32, %c0_i32_0, %c0_i32_1 : i32, i32, i32
  }
  func.func @transform_2(%arg0: i32) -> (i32, i32, i32) {
    %c0_i32 = arith.constant 0 : i32
    %c0_i32_0 = arith.constant 0 : i32
    %c0_i32_1 = arith.constant 0 : i32
    %c0_i32_2 = arith.constant 0 : i32
    return %c0_i32, %c0_i32_0, %c0_i32_1 : i32, i32, i32
  }
  func.func @transform_3(%arg0: i32) -> (i32, i32, i32) {
    %c0_i32 = arith.constant 0 : i32
    %c0_i32_0 = arith.constant 0 : i32
    %c0_i32_1 = arith.constant 0 : i32
    %c0_i32_2 = arith.constant 0 : i32
    return %c0_i32, %c0_i32_0, %c0_i32_1 : i32, i32, i32
  }
  func.func @transform_4(%arg0: i32) -> (i32, i32, i32) {
    %c0_i32 = arith.constant 0 : i32
    %c0_i32_0 = arith.constant 0 : i32
    %c0_i32_1 = arith.constant 0 : i32
    %c0_i32_2 = arith.constant 0 : i32
    return %c0_i32, %c0_i32_0, %c0_i32_1 : i32, i32, i32
  }
  func.func @transform_5(%arg0: i32) -> (i32, i32, i32) {
    %c0_i32 = arith.constant 0 : i32
    %c0_i32_0 = arith.constant 0 : i32
    %c0_i32_1 = arith.constant 0 : i32
    %c0_i32_2 = arith.constant 0 : i32
    return %c0_i32, %c0_i32_0, %c0_i32_1 : i32, i32, i32
  }
  func.func @transform_6(%arg0: i32) -> (i32, i32, i32) {
    %c0_i32 = arith.constant 0 : i32
    %c0_i32_0 = arith.constant 0 : i32
    %c0_i32_1 = arith.constant 0 : i32
    return %arg0, %c0_i32, %c0_i32_0 : i32, i32, i32
  }
  func.func @transform_7(%arg0: i32) -> (i32, i32, i32) {
    %c0_i32 = arith.constant 0 : i32
    %c0_i32_0 = arith.constant 0 : i32
    %c0_i32_1 = arith.constant 0 : i32
    %c0_i32_2 = arith.constant 0 : i32
    return %c0_i32, %c0_i32_0, %c0_i32_1 : i32, i32, i32
  }
}

</mosaic_0001>

<bundles_post_ra>
// kernel: tpu_custom_call.1
= control target key start
LH: loop header
LB: loop body
LE: loop exit
PB: predicated region body
PF: predicated region fallthrough
CT: control target
= control target key end

     0   :  { %13 = vsyncpa [#allocation6], 0  ;;  %s4907_s0 = inlined_call_operand.hbm [shape: f32[8,8,8], index: 0, kind: input, shape index: {}]   ;;  %s4908_s1 = inlined_call_operand.hbm [shape: f32[4,8,32], index: 1, kind: input, shape index: {}]   ;;  %s4909_s2 = inlined_call_operand.hbm [shape: f32[4,32,32], index: 2, kind: input, shape index: {}]   ;;  %s4910_s3 = inlined_call_operand.hbm [shape: f32[4,1,32], index: 3, kind: input, shape index: {}]   ;;  %s4911_s4 = inlined_call_operand.vmem [shape: f32[1,8,32], index: 4, kind: input, shape index: {}]   ;;  %s4912_s5 = inlined_call_operand.vmem [shape: f32[1,8,32], index: 5, kind: input, shape index: {}]   ;;  %s4913_s6 = inlined_call_operand.hbm [shape: f32[8,8,32], index: 6, kind: output, shape index: {0}]   ;;  %s4914_s7 = inlined_call_operand.hbm [shape: f32[1,8,32], index: 7, kind: output, shape index: {1}]  }
   0x1   :  { %14 = vsyncpa [#allocation9], 0 }
   0x2   :  { %15 = vsyncpa [#allocation12], 0 }
   0x3   :  { %16 = vsyncpa [#allocation7], 0 }
   0x4   :  { %17 = vsyncpa [#allocation15], 0  ;;  %s4409_s24 = smov [#allocation8]   ;;  %s4410_s26 = smov [#allocation5]  }
   0x5   :  { %s35_s25 = sshll.u32 %s4409_s24, 4  ;;  %s23_s27 = sshll.u32 %s4410_s26, 4  ;;  %s36_s25 = int_to_ptr.vmem [resolvable:$true] %s35_s25  ;;  %s4462_s27 = int_to_ptr.vmem [resolvable:$true] %s23_s27 }
   0x6   :  { %s4267_s30 = scalar_lea.hbm %s4908_s1, 512 }
   0x7   :  { %p4268_p0 = scmp.ne.s32.totalorder %s4908_s1, %s4267_s30  ;;  %p4271_p1 = scmp.lt.u32.totalorder %s4267_s30, %s4908_s1 }
   0x9   :  { %p4273_p2 = pnand %p4271_p1, %p4268_p0 }
   0xb   :  { %4276 = shalt.err (!%p4273_p2)
}
   0xc   :  { %s4277_s12 = scalar_lea.vmem %s36_s25, 512  ;;  %p4282_p4 = scmp.lt.s32.totalorder %s36_s25, %s36_s25 }
   0xd   :  { %p4278_p3 = scmp.ne.s32.totalorder %s36_s25, %s4277_s12  ;;  %p4283_p5 = scmp.lt.s32.totalorder %s4277_s12, %s4277_s12 }
   0xf   :  { %p4284_p6 = por %p4283_p5, %p4282_p4 }
  0x11   :  { %p4285_p7 = pnand %p4284_p6, %p4278_p3 }
  0x13   :  { %4288 = shalt.err (!%p4285_p7)
}
  0x14   :  { %s4411_s13 = smov 128   ;;  %s4412_s14 = smov 8  }
  0x15   :  { %41 = dma.hbm_to_vmem [thread:$0]  %s4908_s1, 512, %s36_s25, [#allocation9], %s4411_s13, %s4411_s13, %s4412_s14  }
  0x16   :  { %s4289_s19 = scalar_lea.hbm %s4907_s0, 1024 }
  0x17   :  { %p4290_p8 = scmp.ne.s32.totalorder %s4907_s0, %s4289_s19  ;;  %p4293_p9 = scmp.lt.u32.totalorder %s4289_s19, %s4907_s0 }
  0x19   :  { %p4295_p10 = pnand %p4293_p9, %p4290_p8 }
  0x1b   :  { %4298 = shalt.err (!%p4295_p10)
}
  0x1c   :  { %s4299_s24 = scalar_lea.vmem %s4462_s27, 1024  ;;  %p4304_p12 = scmp.lt.s32.totalorder %s4462_s27, %s4462_s27 }
  0x1d   :  { %p4300_p11 = scmp.ne.s32.totalorder %s4462_s27, %s4299_s24  ;;  %p4305_p13 = scmp.lt.s32.totalorder %s4299_s24, %s4299_s24 }
  0x1f   :  { %p4306_p0 = por %p4305_p13, %p4304_p12 }
  0x21   :  { %p4307_p1 = pnand %p4306_p0, %p4300_p11 }
  0x23   :  { %4310 = shalt.err (!%p4307_p1)
}
  0x24   :  { %29 = dma.hbm_to_vmem [thread:$0]  %s4907_s0, 1024, %s4462_s27, [#allocation6], %s4411_s13, %s4411_s13, %s4412_s14  }
  0x25   :  { %s4413_s26 = smov [#allocation10]   ;;  %s4414_s29 = smov [#allocation11]  }
  0x26   :  { %s47_s28 = sshll.u32 %s4413_s26, 4  ;;  %s59_s30 = sshll.u32 %s4414_s29, 4  ;;  %s48_s28 = int_to_ptr.vmem [resolvable:$true] %s47_s28  ;;  %s4499_s30 = int_to_ptr.vmem [resolvable:$true] %s59_s30 }
  0x27   :  { %s4311_s10 = scalar_lea.hbm %s4909_s2, 2048 }
  0x28   :  { %p4312_p2 = scmp.ne.s32.totalorder %s4909_s2, %s4311_s10  ;;  %p4315_p3 = scmp.lt.u32.totalorder %s4311_s10, %s4909_s2 }
  0x2a   :  { %p4317_p4 = pnand %p4315_p3, %p4312_p2 }
  0x2c   :  { %4320 = shalt.err (!%p4317_p4)
}
  0x2d   :  { %s4321_s0 = scalar_lea.vmem %s48_s28, 2048  ;;  %p4326_p6 = scmp.lt.s32.totalorder %s48_s28, %s48_s28 }
  0x2e   :  { %p4322_p5 = scmp.ne.s32.totalorder %s48_s28, %s4321_s0  ;;  %p4327_p7 = scmp.lt.s32.totalorder %s4321_s0, %s4321_s0 }
  0x30   :  { %p4328_p8 = por %p4327_p7, %p4326_p6 }
  0x32   :  { %p4329_p9 = pnand %p4328_p8, %p4322_p5 }
  0x34   :  { %4332 = shalt.err (!%p4329_p9)
}
  0x35   :  { %53 = dma.hbm_to_vmem [thread:$0]  %s4909_s2, 2048, %s48_s28, [#allocation9], %s4411_s13, %s4411_s13, %s4412_s14  }
  0x36   :  { %s4333_s20 = scalar_lea.hbm %s4910_s3, 64 }
  0x37   :  { %p4334_p10 = scmp.ne.s32.totalorder %s4910_s3, %s4333_s20  ;;  %p4337_p11 = scmp.lt.u32.totalorder %s4333_s20, %s4910_s3 }
  0x39   :  { %p4339_p12 = pnand %p4337_p11, %p4334_p10 }
  0x3b   :  { %4342 = shalt.err (!%p4339_p12)
}
  0x3c   :  { %s4343_s1 = scalar_lea.vmem %s4499_s30, 64  ;;  %p4348_p0 = scmp.lt.s32.totalorder %s4499_s30, %s4499_s30 }
  0x3d   :  { %p4344_p13 = scmp.ne.s32.totalorder %s4499_s30, %s4343_s1  ;;  %p4349_p1 = scmp.lt.s32.totalorder %s4343_s1, %s4343_s1 }
  0x3f   :  { %p4350_p2 = por %p4349_p1, %p4348_p0 }
  0x41   :  { %p4351_p3 = pnand %p4350_p2, %p4344_p13 }
  0x43   :  { %4354 = shalt.err (!%p4351_p3)
}
  0x44   :  { %s4415_s2 = smov 16   ;;  %s4416_s25 = smov 1  }
  0x45   :  { %65 = dma.hbm_to_vmem [thread:$0]  %s4910_s3, 64, %s4499_s30, [#allocation12], %s4415_s2, %s4415_s2, %s4416_s25  }
  0x46   :  { %4399 = dma.done.wait [#allocation6], 1024  }
  0x47   :  { %4400 = vsyncadd [#allocation6], 4294966272 }
  0x48   :  { %4401 = dma.done.wait [#allocation9], 2560  }
  0x49   :  { %4402 = vsyncadd [#allocation9], 4294964736 }
  0x4a   :  { %4403 = dma.done.wait [#allocation12], 64  }
  0x4b   :  { %4404 = vsyncadd [#allocation12], 4294967232  ;;  %vm107_vm0 = vcmask 64512   ;;  %v99_v0 = vld [vmem:[#allocation8] sm:$0xff]  ;;  %v247_v1 = vld [vmem:[#allocation8 + $0x8] sm:$0xff]  ;;  %vm87_vm1 = vcmask 261120  }
  0x4c   :  { %v91_v2 = vld [vmem:[#allocation5] sm:$0xff]  ;;  %3526 = vmatprep.subr.mxu0 %v99_v0  ;;  %3540 = vmatprep.subr.mxu1 %v247_v1  ;;  %v92_v3 = vld [vmem:[#allocation5 + $0x8] sm:$0xff]  ;;  %v371_v4 = vld [vmem:[#allocation8 + $0x10] sm:$0xff]  ;;  %v4417_v12 = vmov 0.0|0.0   ;;  %vm4418_vm2 = vmmov 0   ;;  %v4419_v30 = vmov 0.0  }
  0x4d   :  { %3527 = vmatpush3.msra.mxu0 %v99_v0  ;;  %3528 = vmatprep.mubr.msk.f32.mxu0 %vm107_vm0, %v91_v2  ;;  %v495_v5 = vld [vmem:[#allocation8 + $0x18] sm:$0xff]  ;;  %v93_v6 = vld [vmem:[#allocation5 + $0x10] sm:$0xff]  ;;  %v95_v8 = vld [vmem:[#allocation5 + $0x20] sm:$0xff] }
  0x4e   :  { %3541 = vmatpush3.msra.mxu1 %v247_v1  ;;  %3542 = vmatprep.mubr.msk.f32.mxu1 %vm107_vm0, %v91_v2  ;;  %v94_v7 = vld [vmem:[#allocation5 + $0x18] sm:$0xff]  ;;  %v86_v9 = vld [vmem:[%s4911_s4] sm:$0xff]  ;;  %v96_v10 = vld [vmem:[#allocation5 + $0x28] sm:$0xff] }
  0x4f   :  { %3529 = vmatmul.mubr.msk.f32.vlgmr.msra.gmra.mrb[0].mxu0 %vm107_vm0, %v92_v3  ;;  %3543 = vmatmul.mubr.msk.f32.vlgmr.msra.gmra.mrb[0].mxu1 %vm107_vm0, %v92_v3  ;;  %88 = vst.msk [vmem:[#allocation2] sm:$0xff] %vm87_vm1, %v86_v9  ;;  %v97_v11 = vld [vmem:[#allocation5 + $0x30] sm:$0xff]  ;;  %v98_v13 = vld [vmem:[#allocation5 + $0x38] sm:$0xff]  ;;  %v618_v14 = vld [vmem:[#allocation10] sm:$0xff] }
  0x50   :  { %3554 = vmatprep.subr.mxu0 %v371_v4  ;;  %3568 = vmatprep.subr.mxu1 %v495_v5  ;;  %v619_v15 = vld [vmem:[#allocation10 + $0x8] sm:$0xff]  ;;  %v623_v16 = vld [vmem:[#allocation10 + $0x20] sm:$0xff]  ;;  %v620_v20 = vld [vmem:[#allocation10 + $0x10] sm:$0xff] }
  0x51   :  { %3555 = vmatpush3.msra.mxu0 %v371_v4  ;;  %3569 = vmatpush3.msra.mxu1 %v495_v5  ;;  %v624_v17 = vld [vmem:[#allocation10 + $0x28] sm:$0xff]  ;;  %v4557_v18 = vpack.c.bf16 %v619_v15, %v618_v14  ;;  %v621_v21 = vld [vmem:[#allocation10 + $0x18] sm:$0xff]  ;;  %v625_v22 = vld [vmem:[#allocation10 + $0x30] sm:$0xff] }
  0x52   :  { %3531 = vmatprep.mubr.msk.f32.mxu0 %vm107_vm0, %v93_v6  ;;  %3545 = vmatprep.mubr.msk.f32.mxu1 %vm107_vm0, %v93_v6  ;;  %v4559_v19 = vpack.c.bf16 %v624_v17, %v623_v16  ;;  %v626_v23 = vld [vmem:[#allocation10 + $0x38] sm:$0xff]  ;;  %v4567_v24 = vpack.c.bf16 %v621_v21, %v620_v20  ;;  %v628_v26 = vld [vmem:[#allocation10 + $0x40] sm:$0xff]  ;;  %v629_v27 = vld [vmem:[#allocation10 + $0x48] sm:$0xff] }
  0x53   :  { %3532 = vmatmul.mubr.msk.f32.gmra.mrb[2].mxu0 %vm107_vm0, %v94_v7  ;;  %3546 = vmatmul.mubr.msk.f32.gmra.mrb[2].mxu1 %vm107_vm0, %v94_v7  ;;  %v4569_v25 = vpack.c.bf16 %v626_v23, %v625_v22  ;;  %v633_v28 = vld [vmem:[#allocation10 + $0x60] sm:$0xff]  ;;  %v634_v29 = vld [vmem:[#allocation10 + $0x68] sm:$0xff]  ;;  %v4591_v32 = vpack.c.bf16 %v629_v27, %v628_v26  ;;  %v630_v34 = vld [vmem:[#allocation10 + $0x50] sm:$0xff] }
  0x54   :  { %3534 = vmatprep.mubr.msk.f32.mxu0 %vm107_vm0, %v95_v8  ;;  %3548 = vmatprep.mubr.msk.f32.mxu1 %vm107_vm0, %v95_v8  ;;  %v4593_v33 = vpack.c.bf16 %v634_v29, %v633_v28  ;;  %v631_v35 = vld [vmem:[#allocation10 + $0x58] sm:$0xff]  ;;  %v635_v36 = vld [vmem:[#allocation10 + $0x70] sm:$0xff]  ;;  %v3238_v41 = vld [vmem:[#allocation11] ss:$0 sm:$0xff] }
  0x55   :  { %3934 = vmatprep.subr.bf16.mxu0 %v4417_v12  ;;  %3940 = vmatprep.subr.bf16.mxu1 %v4417_v12  ;;  %v636_v37 = vld [vmem:[#allocation10 + $0x78] sm:$0xff]  ;;  %v4599_v38 = vpack.c.bf16 %v631_v35, %v630_v34  ;;  %v89_v40 = vld [vmem:[%s4912_s5] sm:$0xff]  ;;  %v3247_v42 = vld [vmem:[#allocation11 + $0x1] ss:$0 sm:$0xff]  ;;  %s4420_s5 = smov [#allocation14]  }
  0x56   :  { %v637_v31 = vld [vmem:[#allocation2] sm:$0xff]  ;;  %v4601_v39 = vpack.c.bf16 %v636_v37, %v635_v36  ;;  %90 = vst.msk [vmem:[#allocation3] sm:$0xff] %vm87_vm1, %v89_v40  ;;  %s3223_s8 = sshll.u32 %s4420_s5, 4  ;;  %s3224_s8 = int_to_ptr.vmem [resolvable:$true] %s3223_s8 }
  0x57   :  { %3535 = vmatmul.mubr.msk.f32.gmra.mrb[4].mxu0 %vm107_vm0, %v96_v10  ;;  %3549 = vmatmul.mubr.msk.f32.gmra.mrb[4].mxu1 %vm107_vm0, %v96_v10  ;;  %s4355_s9 = scalar_lea.vmem %s3224_s8, 128  ;;  %p4360_p5 = scmp.lt.s32.totalorder %s3224_s8, %s3224_s8 }
  0x58   :  { %3537 = vmatprep.mubr.msk.f32.mxu0 %vm107_vm0, %v97_v11  ;;  %3551 = vmatprep.mubr.msk.f32.mxu1 %vm107_vm0, %v97_v11  ;;  %p4356_p4 = scmp.ne.s32.totalorder %s3224_s8, %s4355_s9  ;;  %p4361_p6 = scmp.lt.s32.totalorder %s4355_s9, %s4355_s9 }
  0x5a   :  { %p4362_p7 = por %p4361_p6, %p4360_p5 }
  0x5b   :  { %3538 = vmatmul.mubr.msk.f32.gmra.mrb[6].mxu0 %vm107_vm0, %v98_v13  ;;  %3552 = vmatmul.mubr.msk.f32.gmra.mrb[6].mxu1 %vm107_vm0, %v98_v13 }
  0x5c   :  { %3556 = vmatprep.mubr.msk.f32.mxu0 %vm107_vm0, %v91_v2  ;;  %3570 = vmatprep.mubr.msk.f32.mxu1 %vm107_vm0, %v91_v2  ;;  %p4363_p8 = pnand %p4362_p7, %p4356_p4 }
  0x5f   :  { %3557 = vmatmul.mubr.msk.f32.vlgmr.msra.gmra.mrb[8].mxu0 %vm107_vm0, %v92_v3  ;;  %3571 = vmatmul.mubr.msk.f32.vlgmr.msra.gmra.mrb[8].mxu1 %vm107_vm0, %v92_v3 }
  0x60   :  { %3936 = vmatpush3.bf16.msra.mxu0 %v4557_v18  ;;  %3942 = vmatpush3.bf16.msra.mxu1 %v4559_v19 }
  0x61   :  { %3559 = vmatprep.mubr.msk.f32.mxu0 %vm107_vm0, %v93_v6  ;;  %3573 = vmatprep.mubr.msk.f32.mxu1 %vm107_vm0, %v93_v6 }
  0x62   :  { %3937 = vmatprep.subr.bf16.mxu0 %v4417_v12  ;;  %3943 = vmatprep.subr.bf16.mxu1 %v4417_v12 }
  0x63   :  { %3560 = vmatmul.mubr.msk.f32.gmra.mrb[10].mxu0 %vm107_vm0, %v94_v7  ;;  %3574 = vmatmul.mubr.msk.f32.gmra.mrb[10].mxu1 %vm107_vm0, %v94_v7 }
  0x64   :  { %3562 = vmatprep.mubr.msk.f32.mxu0 %vm107_vm0, %v95_v8  ;;  %3576 = vmatprep.mubr.msk.f32.mxu1 %vm107_vm0, %v95_v8 }
  0x65   :  { %3939 = vmatpush3.bf16.msra.mxu0 %v4567_v24  ;;  %3945 = vmatpush3.bf16.msra.mxu1 %v4569_v25 }
  0x66   :  { %3946 = vmatprep.subr.bf16.mxu0 %v4417_v12  ;;  %3952 = vmatprep.subr.bf16.mxu1 %v4417_v12 }
  0x67   :  { %3563 = vmatmul.mubr.msk.f32.gmra.mrb[12].mxu0 %vm107_vm0, %v96_v10  ;;  %3577 = vmatmul.mubr.msk.f32.gmra.mrb[12].mxu1 %vm107_vm0, %v96_v10 }
  0x68   :  { %3565 = vmatprep.mubr.msk.f32.mxu0 %vm107_vm0, %v97_v11  ;;  %3579 = vmatprep.mubr.msk.f32.mxu1 %vm107_vm0, %v97_v11  ;;  %v3256_v11 = vld [vmem:[#allocation11 + $0x2] ss:$0 sm:$0xff] }
  0x6b   :  { %3566 = vmatmul.mubr.msk.f32.gmra.mrb[14].mxu0 %vm107_vm0, %v98_v13  ;;  %3580 = vmatmul.mubr.msk.f32.gmra.mrb[14].mxu1 %vm107_vm0, %v98_v13  ;;  %v3265_v13 = vld [vmem:[#allocation11 + $0x3] ss:$0 sm:$0xff] }
  0x6c   :  { %3590 = vmatprep.mubr.msk.f32.mxu0 %vm4418_vm2, %v4419_v30  ;;  %3601 = vmatprep.mubr.msk.f32.mxu1 %vm4418_vm2, %v4419_v30 }
  0x6f   :  { %3591 = vmatmul.mubr.msk.f32.vlgmr.msra.gmra.mrb[16].mxu0 %vm87_vm1, %v637_v31  ;;  %3602 = vmatmul.mubr.msk.f32.vlgmr.msra.gmra.mrb[16].mxu1 %vm87_vm1, %v637_v31 }
  0x70   :  { %3948 = vmatpush3.bf16.msra.mxu0 %v4591_v32  ;;  %3954 = vmatpush3.bf16.msra.mxu1 %v4593_v33 }
  0x71   :  { %3949 = vmatprep.subr.bf16.mxu0 %v4417_v12  ;;  %3955 = vmatprep.subr.bf16.mxu1 %v4417_v12 }
  0x72   :  { %3612 = vmatprep.mubr.msk.f32.mxu0 %vm4418_vm2, %v4419_v30  ;;  %3623 = vmatprep.mubr.msk.f32.mxu1 %vm4418_vm2, %v4419_v30 }
  0x74   :  { %3951 = vmatpush3.bf16.msra.mxu0 %v4599_v38  ;;  %3957 = vmatpush3.bf16.msra.mxu1 %v4601_v39 }
  0x75   :  { %3958 = vmatprep.subr.bf16.mxu0 %v4417_v12  ;;  %3964 = vmatprep.subr.bf16.mxu1 %v4417_v12 }
  0x77   :  { %3613 = vmatmul.mubr.msk.f32.vlgmr.msra.gmra.mrb[18].mxu0 %vm87_vm1, %v637_v31  ;;  %3624 = vmatmul.mubr.msk.f32.vlgmr.msra.gmra.mrb[18].mxu1 %vm87_vm1, %v637_v31 }
  0x78   :  { %3960 = vmatpush3.bf16.msra.mxu0 %v4557_v18  ;;  %3966 = vmatpush3.bf16.msra.mxu1 %v4559_v19 }
  0x79   :  { %3961 = vmatprep.subr.bf16.mxu0 %v4417_v12  ;;  %3967 = vmatprep.subr.bf16.mxu1 %v4417_v12 }
  0x7a   :  { %3634 = vmatprep.mubr.msk.f32.mxu0 %vm4418_vm2, %v4419_v30  ;;  %3645 = vmatprep.mubr.msk.f32.mxu1 %vm4418_vm2, %v4419_v30 }
  0x7c   :  { %3963 = vmatpush3.bf16.msra.mxu0 %v4567_v24  ;;  %3969 = vmatpush3.bf16.msra.mxu1 %v4569_v25 }
  0x7d   :  { %3970 = vmatprep.subr.bf16.mxu0 %v4417_v12  ;;  %3976 = vmatprep.subr.bf16.mxu1 %v4417_v12 }
 0x122   :  { %v3530_v43 = vpop.f32.mrb[0].mxu0  ;;  %v3544_v44 = vpop.f32.mrb[0].mxu1 }
 0x123   :  { %v204_v45 = vadd.f32 %v3530_v43, %v3238_v41  ;;  %v328_v46 = vadd.f32 %v3544_v44, %v3247_v42  ;;  %v198_v47 = vpop.f32.mrb[1].mxu0  ;;  %v322_v48 = vpop.f32.mrb[1].mxu1 }
 0x124   :  { %v199_v49 = vadd.f32 %v3238_v41, %v198_v47  ;;  %v323_v50 = vadd.f32 %v3247_v42, %v322_v48 }
 0x125   :  { %239 = vst.msk [vmem:[#allocation4 + $0x8] sm:$0xff] %vm87_vm1, %v204_v45  ;;  %363 = vst.msk [vmem:[#allocation4 + $0x48] sm:$0xff] %vm87_vm1, %v328_v46 }
 0x126   :  { %238 = vst.msk [vmem:[#allocation4] sm:$0xff] %vm87_vm1, %v199_v49  ;;  %362 = vst.msk [vmem:[#allocation4 + $0x40] sm:$0xff] %vm87_vm1, %v323_v50  ;;  %v3533_v51 = vpop.f32.mrb[2].mxu0  ;;  %v3547_v52 = vpop.f32.mrb[2].mxu1 }
 0x127   :  { %v214_v53 = vadd.f32 %v3533_v51, %v3238_v41  ;;  %v338_v54 = vadd.f32 %v3547_v52, %v3247_v42  ;;  %v208_v55 = vpop.f32.mrb[3].mxu0  ;;  %v332_v56 = vpop.f32.mrb[3].mxu1 }
 0x128   :  { %v209_v57 = vadd.f32 %v3238_v41, %v208_v55  ;;  %v333_v58 = vadd.f32 %v3247_v42, %v332_v56 }
 0x129   :  { %241 = vst.msk [vmem:[#allocation4 + $0x18] sm:$0xff] %vm87_vm1, %v214_v53  ;;  %365 = vst.msk [vmem:[#allocation4 + $0x58] sm:$0xff] %vm87_vm1, %v338_v54 }
 0x12a   :  { %240 = vst.msk [vmem:[#allocation4 + $0x10] sm:$0xff] %vm87_vm1, %v209_v57  ;;  %364 = vst.msk [vmem:[#allocation4 + $0x50] sm:$0xff] %vm87_vm1, %v333_v58  ;;  %v3536_v59 = vpop.f32.mrb[4].mxu0  ;;  %v3550_v60 = vpop.f32.mrb[4].mxu1 }
 0x12b   :  { %v224_v61 = vadd.f32 %v3536_v59, %v3238_v41  ;;  %v348_v62 = vadd.f32 %v3550_v60, %v3247_v42  ;;  %v218_v63 = vpop.f32.mrb[5].mxu0  ;;  %v342_v0 = vpop.f32.mrb[5].mxu1 }
 0x12c   :  { %v219_v1 = vadd.f32 %v3238_v41, %v218_v63  ;;  %v343_v2 = vadd.f32 %v3247_v42, %v342_v0 }
 0x12d   :  { %243 = vst.msk [vmem:[#allocation4 + $0x28] sm:$0xff] %vm87_vm1, %v224_v61  ;;  %367 = vst.msk [vmem:[#allocation4 + $0x68] sm:$0xff] %vm87_vm1, %v348_v62  ;;  %v639_v55 = vld [vmem:[#allocation4] sm:$0xff] }
 0x12e   :  { %242 = vst.msk [vmem:[#allocation4 + $0x20] sm:$0xff] %vm87_vm1, %v219_v1  ;;  %366 = vst.msk [vmem:[#allocation4 + $0x60] sm:$0xff] %vm87_vm1, %v343_v2  ;;  %v3539_v3 = vpop.f32.mrb[6].mxu0  ;;  %v3553_v4 = vpop.f32.mrb[6].mxu1  ;;  %v714_v57 = vld [vmem:[#allocation4 + $0x40] sm:$0xff] }
 0x12f   :  { %v234_v5 = vadd.f32 %v3539_v3, %v3238_v41  ;;  %v358_v6 = vadd.f32 %v3553_v4, %v3247_v42  ;;  %v228_v7 = vpop.f32.mrb[7].mxu0  ;;  %v352_v8 = vpop.f32.mrb[7].mxu1 }
 0x130   :  { %v229_v9 = vadd.f32 %v3238_v41, %v228_v7  ;;  %v353_v10 = vadd.f32 %v3247_v42, %v352_v8 }
 0x131   :  { %245 = vst.msk [vmem:[#allocation4 + $0x38] sm:$0xff] %vm87_vm1, %v234_v5  ;;  %369 = vst.msk [vmem:[#allocation4 + $0x78] sm:$0xff] %vm87_vm1, %v358_v6 }
 0x132   :  { %244 = vst.msk [vmem:[#allocation4 + $0x30] sm:$0xff] %vm87_vm1, %v229_v9  ;;  %368 = vst.msk [vmem:[#allocation4 + $0x70] sm:$0xff] %vm87_vm1, %v353_v10  ;;  %v3558_v14 = vpop.f32.mrb[8].mxu0  ;;  %v3572_v15 = vpop.f32.mrb[8].mxu1 }
 0x133   :  { %v452_v16 = vadd.f32 %v3558_v14, %v3256_v11  ;;  %v576_v17 = vadd.f32 %v3572_v15, %v3265_v13  ;;  %v446_v20 = vpop.f32.mrb[9].mxu0  ;;  %v570_v21 = vpop.f32.mrb[9].mxu1 }
 0x134   :  { %v447_v22 = vadd.f32 %v3256_v11, %v446_v20  ;;  %v571_v23 = vadd.f32 %v3265_v13, %v570_v21 }
 0x135   :  { %487 = vst.msk [vmem:[#allocation4 + $0x88] sm:$0xff] %vm87_vm1, %v452_v16  ;;  %611 = vst.msk [vmem:[#allocation4 + $0xc8] sm:$0xff] %vm87_vm1, %v576_v17  ;;  %v638_v17 = vld [vmem:[#allocation3] sm:$0xff] }
 0x136   :  { %486 = vst.msk [vmem:[#allocation4 + $0x80] sm:$0xff] %vm87_vm1, %v447_v22  ;;  %610 = vst.msk [vmem:[#allocation4 + $0xc0] sm:$0xff] %vm87_vm1, %v571_v23  ;;  %v3561_v26 = vpop.f32.mrb[10].mxu0  ;;  %v3575_v27 = vpop.f32.mrb[10].mxu1 }
 0x137   :  { %v462_v28 = vadd.f32 %v3561_v26, %v3256_v11  ;;  %v586_v29 = vadd.f32 %v3575_v27, %v3265_v13  ;;  %v456_v31 = vpop.f32.mrb[11].mxu0  ;;  %v580_v34 = vpop.f32.mrb[11].mxu1 }
 0x138   :  { %v457_v35 = vadd.f32 %v3256_v11, %v456_v31  ;;  %v581_v36 = vadd.f32 %v3265_v13, %v580_v34  ;;  %v956_v34 = vld [vmem:[#allocation4 + $0x8] sm:$0xff] }
 0x139   :  { %489 = vst.msk [vmem:[#allocation4 + $0x98] sm:$0xff] %vm87_vm1, %v462_v28  ;;  %613 = vst.msk [vmem:[#allocation4 + $0xd8] sm:$0xff] %vm87_vm1, %v586_v29 }
 0x13a   :  { %488 = vst.msk [vmem:[#allocation4 + $0x90] sm:$0xff] %vm87_vm1, %v457_v35  ;;  %612 = vst.msk [vmem:[#allocation4 + $0xd0] sm:$0xff] %vm87_vm1, %v581_v36  ;;  %v3564_v37 = vpop.f32.mrb[12].mxu0  ;;  %v3578_v40 = vpop.f32.mrb[12].mxu1  ;;  %v1032_v36 = vld [vmem:[#allocation4 + $0x48] sm:$0xff] }
 0x13b   :  { %v472_v41 = vadd.f32 %v3564_v37, %v3256_v11  ;;  %v596_v42 = vadd.f32 %v3578_v40, %v3265_v13  ;;  %v466_v43 = vpop.f32.mrb[13].mxu0  ;;  %v590_v44 = vpop.f32.mrb[13].mxu1 }
 0x13c   :  { %v467_v45 = vadd.f32 %v3256_v11, %v466_v43  ;;  %v591_v46 = vadd.f32 %v3265_v13, %v590_v44 }
 0x13d   :  { %491 = vst.msk [vmem:[#allocation4 + $0xa8] sm:$0xff] %vm87_vm1, %v472_v41  ;;  %615 = vst.msk [vmem:[#allocation4 + $0xe8] sm:$0xff] %vm87_vm1, %v596_v42  ;;  %v858_v2 = vld [vmem:[#allocation4 + $0xc0] sm:$0xff] }
 0x13e   :  { %490 = vst.msk [vmem:[#allocation4 + $0xa0] sm:$0xff] %vm87_vm1, %v467_v45  ;;  %614 = vst.msk [vmem:[#allocation4 + $0xe0] sm:$0xff] %vm87_vm1, %v591_v46  ;;  %v3567_v47 = vpop.f32.mrb[14].mxu0  ;;  %v3581_v48 = vpop.f32.mrb[14].mxu1  ;;  %v786_v7 = vld [vmem:[#allocation4 + $0x80] sm:$0xff] }
 0x13f   :  { %v482_v49 = vadd.f32 %v3567_v47, %v3256_v11  ;;  %v606_v50 = vadd.f32 %v3581_v48, %v3265_v13  ;;  %v476_v51 = vpop.f32.mrb[15].mxu0  ;;  %v600_v52 = vpop.f32.mrb[15].mxu1  ;;  %v1178_v47 = vld [vmem:[#allocation4 + $0xc8] sm:$0xff] }
 0x140   :  { %v477_v53 = vadd.f32 %v3256_v11, %v476_v51  ;;  %v601_v54 = vadd.f32 %v3265_v13, %v600_v52  ;;  %v1105_v52 = vld [vmem:[#allocation4 + $0x88] sm:$0xff] }
 0x141   :  { %493 = vst.msk [vmem:[#allocation4 + $0xb8] sm:$0xff] %vm87_vm1, %v482_v49  ;;  %617 = vst.msk [vmem:[#allocation4 + $0xf8] sm:$0xff] %vm87_vm1, %v606_v50 }
 0x142   :  { %492 = vst.msk [vmem:[#allocation4 + $0xb0] sm:$0xff] %vm87_vm1, %v477_v53  ;;  %616 = vst.msk [vmem:[#allocation4 + $0xf0] sm:$0xff] %vm87_vm1, %v601_v54  ;;  %v709_v56 = vpop.f32.mrb[16].mxu0  ;;  %v781_v58 = vpop.f32.mrb[16].mxu1 }
 0x143   :  { %v713_v59 = vadd.f32 %v709_v56, %v639_v55  ;;  %v785_v60 = vadd.f32 %v781_v58, %v714_v57  ;;  %v3592_v61 = vpop.f32.mrb[17].mxu0  ;;  %v3603_v62 = vpop.f32.mrb[17].mxu1 }
 0x145   :  { %v3278_v63 = vmul.f32 -1.442695, %v713_v59  ;;  %v3279_v0 = vmul.f32 -1.442695, %v785_v60 }
 0x147   :  { %4139 = vpow2.f32 %v3278_v63 }
 0x148   :  { %4141 = vpow2.f32 %v3279_v0 }
 0x14a   :  { %v853_v1 = vpop.f32.mrb[18].mxu0  ;;  %v925_v3 = vpop.f32.mrb[18].mxu1 }
 0x14b   :  { %v929_v4 = vadd.f32 %v925_v3, %v858_v2  ;;  %v3614_v5 = vpop.f32.mrb[19].mxu0  ;;  %v3625_v6 = vpop.f32.mrb[19].mxu1  ;;  %v857_v9 = vadd.f32 %v853_v1, %v786_v7 }
 0x14c   :  { %v1277_v6 = vld [vmem:[#allocation4 + $0x10] sm:$0xff] }
 0x14d   :  { %v3280_v8 = vmul.f32 -1.442695, %v929_v4 }
 0x14f   :  { %4143 = vpow2.f32 %v3280_v8  ;;  %v1353_v8 = vld [vmem:[#allocation4 + $0x50] sm:$0xff] }
 0x150   :  { %4145 = vtanh.f32 %v857_v9 }
 0x151   :  { %v4140_v10 = vpop.eup %4139 }
 0x152   :  { %v4142_v11 = vpop.eup %4141  ;;  %v933_v13 = vadd.f32 1.0, %v4140_v10 }
 0x153   :  { %v939_v14 = vadd.f32 1.0, %v4142_v11 }
 0x154   :  { %4147 = vrcp.f32 %v933_v13 }
 0x155   :  { %4149 = vrcp.f32 %v939_v14 }
 0x159   :  { %v4144_v15 = vpop.eup %4143 }
 0x15a   :  { %v4146_v16 = vpop.eup %4145  ;;  %v946_v23 = vadd.f32 1.0, %v4144_v15 }
 0x15c   :  { %4151 = vrcp.f32 %v946_v23 }
 0x15e   :  { %v4148_v20 = vpop.eup %4147 }
 0x15f   :  { %v4150_v21 = vpop.eup %4149  ;;  %v950_v22 = vmul.f32 %v4148_v20, %v4146_v16  ;;  %v1499_v20 = vld [vmem:[#allocation4 + $0xd0] sm:$0xff] }
 0x160   :  { %v949_v26 = vmul.f32 %v4150_v21, %v638_v17 }
 0x162   :  { %v4663_v27 = vadd.f32 %v950_v22, %v949_v26 }
 0x164   :  { %4153 = vtanh.f32 %v4663_v27 }
 0x166   :  { %v4152_v28 = vpop.eup %4151 }
 0x16e   :  { %v4154_v29 = vpop.eup %4153 }
 0x16f   :  { %v953_v31 = vmul.f32 %v4154_v29, %v4152_v28 }
 0x171   :  { %3635 = vmatmul.mubr.msk.f32.vlgmr.msra.gmra.mrb[20].mxu0 %vm87_vm1, %v953_v31  ;;  %954 = vst.msk [vmem:[#allocation13] sm:$0xff] %vm87_vm1, %v953_v31  ;;  %3646 = vmatmul.mubr.msk.f32.vlgmr.msra.gmra.mrb[20].mxu1 %vm87_vm1, %v953_v31 }
 0x172   :  { %3972 = vmatpush3.bf16.msra.mxu0 %v4591_v32  ;;  %3978 = vmatpush3.bf16.msra.mxu1 %v4593_v33 }
 0x173   :  { %3973 = vmatprep.subr.bf16.mxu0 %v4417_v12  ;;  %3979 = vmatprep.subr.bf16.mxu1 %v4417_v12 }
 0x174   :  { %3656 = vmatprep.mubr.msk.f32.mxu0 %vm4418_vm2, %v4419_v30  ;;  %3667 = vmatprep.mubr.msk.f32.mxu1 %vm4418_vm2, %v4419_v30 }
 0x176   :  { %3975 = vmatpush3.bf16.msra.mxu0 %v4599_v38  ;;  %3981 = vmatpush3.bf16.msra.mxu1 %v4601_v39 }
 0x177   :  { %3982 = vmatprep.subr.bf16.mxu0 %v4417_v12  ;;  %3988 = vmatprep.subr.bf16.mxu1 %v4417_v12 }
 0x179   :  { %3657 = vmatmul.mubr.msk.f32.vlgmr.msra.gmra.mrb[22].mxu0 %vm87_vm1, %v953_v31  ;;  %3668 = vmatmul.mubr.msk.f32.vlgmr.msra.gmra.mrb[22].mxu1 %vm87_vm1, %v953_v31 }
 0x17a   :  { %3984 = vmatpush3.bf16.msra.mxu0 %v4557_v18  ;;  %3990 = vmatpush3.bf16.msra.mxu1 %v4559_v19 }
 0x17b   :  { %3985 = vmatprep.subr.bf16.mxu0 %v4417_v12  ;;  %3991 = vmatprep.subr.bf16.mxu1 %v4417_v12 }
 0x17c   :  { %3678 = vmatprep.mubr.msk.f32.mxu0 %vm4418_vm2, %v4419_v30  ;;  %3689 = vmatprep.mubr.msk.f32.mxu1 %vm4418_vm2, %v4419_v30 }
 0x17e   :  { %3987 = vmatpush3.bf16.msra.mxu0 %v4567_v24  ;;  %3993 = vmatpush3.bf16.msra.mxu1 %v4569_v25 }
 0x17f   :  { %3994 = vmatprep.subr.bf16.mxu0 %v4417_v12  ;;  %4000 = vmatprep.subr.bf16.mxu1 %v4417_v12 }
 0x244   :  { %v1026_v35 = vpop.f32.mrb[20].mxu0  ;;  %v1099_v37 = vpop.f32.mrb[20].mxu1 }
 0x245   :  { %v1030_v40 = vadd.f32 %v1026_v35, %v956_v34  ;;  %v1103_v41 = vadd.f32 %v1099_v37, %v1032_v36  ;;  %v3636_v42 = vpop.f32.mrb[21].mxu0  ;;  %v3647_v43 = vpop.f32.mrb[21].mxu1 }
 0x247   :  { %v3285_v44 = vmul.f32 -1.442695, %v1030_v40  ;;  %v3286_v45 = vmul.f32 -1.442695, %v1103_v41 }
 0x249   :  { %4155 = vpow2.f32 %v3285_v44 }
 0x24a   :  { %4157 = vpow2.f32 %v3286_v45 }
 0x24c   :  { %v1172_v46 = vpop.f32.mrb[22].mxu0  ;;  %v1245_v48 = vpop.f32.mrb[22].mxu1 }
 0x24d   :  { %v1249_v49 = vadd.f32 %v1245_v48, %v1178_v47  ;;  %v3658_v50 = vpop.f32.mrb[23].mxu0  ;;  %v3669_v51 = vpop.f32.mrb[23].mxu1  ;;  %v1176_v54 = vadd.f32 %v1172_v46, %v1105_v52  ;;  %v1674_v52 = vld [vmem:[#allocation4 + $0x58] sm:$0xff] }
 0x24e   :  { %v1598_v50 = vld [vmem:[#allocation4 + $0x18] sm:$0xff] }
 0x24f   :  { %v3287_v53 = vmul.f32 -1.442695, %v1249_v49 }
 0x251   :  { %4159 = vpow2.f32 %v3287_v53 }
 0x252   :  { %4161 = vtanh.f32 %v1176_v54 }
 0x253   :  { %v4156_v55 = vpop.eup %4155 }
 0x254   :  { %v4158_v56 = vpop.eup %4157  ;;  %v1253_v57 = vadd.f32 1.0, %v4156_v55 }
 0x255   :  { %v1259_v58 = vadd.f32 1.0, %v4158_v56 }
 0x256   :  { %4163 = vrcp.f32 %v1253_v57 }
 0x257   :  { %4165 = vrcp.f32 %v1259_v58 }
 0x25b   :  { %v4160_v59 = vpop.eup %4159 }
 0x25c   :  { %v4162_v60 = vpop.eup %4161  ;;  %v1266_v0 = vadd.f32 1.0, %v4160_v59 }
 0x25e   :  { %4167 = vrcp.f32 %v1266_v0 }
 0x260   :  { %v4164_v61 = vpop.eup %4163 }
 0x261   :  { %v4166_v62 = vpop.eup %4165  ;;  %v1270_v63 = vmul.f32 %v4164_v61, %v4162_v60  ;;  %v1820_v61 = vld [vmem:[#allocation4 + $0xd8] sm:$0xff] }
 0x262   :  { %v1269_v1 = vmul.f32 %v4166_v62, %v4663_v27  ;;  %v1426_v27 = vld [vmem:[#allocation4 + $0x90] sm:$0xff] }
 0x264   :  { %v4696_v2 = vadd.f32 %v1270_v63, %v1269_v1 }
 0x266   :  { %4169 = vtanh.f32 %v4696_v2 }
 0x268   :  { %v4168_v3 = vpop.eup %4167 }
 0x270   :  { %v4170_v4 = vpop.eup %4169 }
 0x271   :  { %v1273_v5 = vmul.f32 %v4170_v4, %v4168_v3 }
 0x273   :  { %3679 = vmatmul.mubr.msk.f32.vlgmr.msra.gmra.mrb[24].mxu0 %vm87_vm1, %v1273_v5  ;;  %1275 = vst.msk [vmem:[#allocation13 + $0x8] sm:$0xff] %vm87_vm1, %v1273_v5  ;;  %3690 = vmatmul.mubr.msk.f32.vlgmr.msra.gmra.mrb[24].mxu1 %vm87_vm1, %v1273_v5 }
 0x274   :  { %3996 = vmatpush3.bf16.msra.mxu0 %v4591_v32  ;;  %4002 = vmatpush3.bf16.msra.mxu1 %v4593_v33 }
 0x275   :  { %3997 = vmatprep.subr.bf16.mxu0 %v4417_v12  ;;  %4003 = vmatprep.subr.bf16.mxu1 %v4417_v12 }
 0x276   :  { %3700 = vmatprep.mubr.msk.f32.mxu0 %vm4418_vm2, %v4419_v30  ;;  %3711 = vmatprep.mubr.msk.f32.mxu1 %vm4418_vm2, %v4419_v30 }
 0x278   :  { %3999 = vmatpush3.bf16.msra.mxu0 %v4599_v38  ;;  %4005 = vmatpush3.bf16.msra.mxu1 %v4601_v39 }
 0x279   :  { %4006 = vmatprep.subr.bf16.mxu0 %v4417_v12  ;;  %4012 = vmatprep.subr.bf16.mxu1 %v4417_v12 }
 0x27b   :  { %3701 = vmatmul.mubr.msk.f32.vlgmr.msra.gmra.mrb[26].mxu0 %vm87_vm1, %v1273_v5  ;;  %3712 = vmatmul.mubr.msk.f32.vlgmr.msra.gmra.mrb[26].mxu1 %vm87_vm1, %v1273_v5 }
 0x27c   :  { %4008 = vmatpush3.bf16.msra.mxu0 %v4557_v18  ;;  %4014 = vmatpush3.bf16.msra.mxu1 %v4559_v19 }
 0x27d   :  { %4009 = vmatprep.subr.bf16.mxu0 %v4417_v12  ;;  %4015 = vmatprep.subr.bf16.mxu1 %v4417_v12 }
 0x27e   :  { %3722 = vmatprep.mubr.msk.f32.mxu0 %vm4418_vm2, %v4419_v30  ;;  %3733 = vmatprep.mubr.msk.f32.mxu1 %vm4418_vm2, %v4419_v30 }
 0x280   :  { %4011 = vmatpush3.bf16.msra.mxu0 %v4567_v24  ;;  %4017 = vmatpush3.bf16.msra.mxu1 %v4569_v25 }
 0x281   :  { %4018 = vmatprep.subr.bf16.mxu0 %v4417_v12  ;;  %4024 = vmatprep.subr.bf16.mxu1 %v4417_v12 }
 0x346   :  { %v1347_v7 = vpop.f32.mrb[24].mxu0  ;;  %v1420_v9 = vpop.f32.mrb[24].mxu1 }
 0x347   :  { %v1351_v10 = vadd.f32 %v1347_v7, %v1277_v6  ;;  %v1424_v11 = vadd.f32 %v1420_v9, %v1353_v8  ;;  %v3680_v13 = vpop.f32.mrb[25].mxu0  ;;  %v3691_v14 = vpop.f32.mrb[25].mxu1 }
 0x349   :  { %v3292_v15 = vmul.f32 -1.442695, %v1351_v10  ;;  %v3293_v16 = vmul.f32 -1.442695, %v1424_v11 }
 0x34b   :  { %4171 = vpow2.f32 %v3292_v15 }
 0x34c   :  { %4173 = vpow2.f32 %v3293_v16 }
 0x34e   :  { %v1493_v17 = vpop.f32.mrb[26].mxu0  ;;  %v1566_v21 = vpop.f32.mrb[26].mxu1 }
 0x34f   :  { %v1570_v22 = vadd.f32 %v1566_v21, %v1499_v20  ;;  %v3702_v23 = vpop.f32.mrb[27].mxu0  ;;  %v3713_v26 = vpop.f32.mrb[27].mxu1  ;;  %v1497_v29 = vadd.f32 %v1493_v17, %v1426_v27  ;;  %v1995_v27 = vld [vmem:[#allocation4 + $0x60] sm:$0xff] }
 0x350   :  { %v1919_v23 = vld [vmem:[#allocation4 + $0x20] sm:$0xff] }
 0x351   :  { %v3294_v28 = vmul.f32 -1.442695, %v1570_v22 }
 0x353   :  { %4175 = vpow2.f32 %v3294_v28 }
 0x354   :  { %4177 = vtanh.f32 %v1497_v29 }
 0x355   :  { %v4172_v31 = vpop.eup %4171 }
 0x356   :  { %v4174_v34 = vpop.eup %4173  ;;  %v1574_v35 = vadd.f32 1.0, %v4172_v31 }
 0x357   :  { %v1580_v36 = vadd.f32 1.0, %v4174_v34 }
 0x358   :  { %4179 = vrcp.f32 %v1574_v35 }
 0x359   :  { %4181 = vrcp.f32 %v1580_v36 }
 0x35d   :  { %v4176_v37 = vpop.eup %4175 }
 0x35e   :  { %v4178_v40 = vpop.eup %4177  ;;  %v1587_v44 = vadd.f32 1.0, %v4176_v37 }
 0x360   :  { %4183 = vrcp.f32 %v1587_v44 }
 0x362   :  { %v4180_v41 = vpop.eup %4179 }
 0x363   :  { %v4182_v42 = vpop.eup %4181  ;;  %v1591_v43 = vmul.f32 %v4180_v41, %v4178_v40  ;;  %v2141_v41 = vld [vmem:[#allocation4 + $0xe0] sm:$0xff] }
 0x364   :  { %v1590_v45 = vmul.f32 %v4182_v42, %v4696_v2  ;;  %v1747_v2 = vld [vmem:[#allocation4 + $0x98] sm:$0xff] }
 0x366   :  { %v4729_v46 = vadd.f32 %v1591_v43, %v1590_v45 }
 0x368   :  { %4185 = vtanh.f32 %v4729_v46 }
 0x36a   :  { %v4184_v47 = vpop.eup %4183 }
 0x372   :  { %v4186_v48 = vpop.eup %4185 }
 0x373   :  { %v1594_v49 = vmul.f32 %v4186_v48, %v4184_v47 }
 0x375   :  { %3723 = vmatmul.mubr.msk.f32.vlgmr.msra.gmra.mrb[28].mxu0 %vm87_vm1, %v1594_v49  ;;  %1596 = vst.msk [vmem:[#allocation13 + $0x10] sm:$0xff] %vm87_vm1, %v1594_v49  ;;  %3734 = vmatmul.mubr.msk.f32.vlgmr.msra.gmra.mrb[28].mxu1 %vm87_vm1, %v1594_v49 }
 0x376   :  { %4020 = vmatpush3.bf16.msra.mxu0 %v4591_v32  ;;  %4026 = vmatpush3.bf16.msra.mxu1 %v4593_v33 }
 0x377   :  { %4021 = vmatprep.subr.bf16.mxu0 %v4417_v12  ;;  %4027 = vmatprep.subr.bf16.mxu1 %v4417_v12 }
 0x378   :  { %3744 = vmatprep.mubr.msk.f32.mxu0 %vm4418_vm2, %v4419_v30  ;;  %3755 = vmatprep.mubr.msk.f32.mxu1 %vm4418_vm2, %v4419_v30 }
 0x37a   :  { %4023 = vmatpush3.bf16.msra.mxu0 %v4599_v38  ;;  %4029 = vmatpush3.bf16.msra.mxu1 %v4601_v39 }
 0x37b   :  { %4030 = vmatprep.subr.bf16.mxu0 %v4417_v12  ;;  %4036 = vmatprep.subr.bf16.mxu1 %v4417_v12 }
 0x37d   :  { %3745 = vmatmul.mubr.msk.f32.vlgmr.msra.gmra.mrb[30].mxu0 %vm87_vm1, %v1594_v49  ;;  %3756 = vmatmul.mubr.msk.f32.vlgmr.msra.gmra.mrb[30].mxu1 %vm87_vm1, %v1594_v49 }
 0x37e   :  { %4032 = vmatpush3.bf16.msra.mxu0 %v4557_v18  ;;  %4038 = vmatpush3.bf16.msra.mxu1 %v4559_v19 }
 0x37f   :  { %4033 = vmatprep.subr.bf16.mxu0 %v4417_v12  ;;  %4039 = vmatprep.subr.bf16.mxu1 %v4417_v12 }
 0x380   :  { %3766 = vmatprep.mubr.msk.f32.mxu0 %vm4418_vm2, %v4419_v30  ;;  %3777 = vmatprep.mubr.msk.f32.mxu1 %vm4418_vm2, %v4419_v30 }
 0x382   :  { %4035 = vmatpush3.bf16.msra.mxu0 %v4567_v24  ;;  %4041 = vmatpush3.bf16.msra.mxu1 %v4569_v25 }
 0x383   :  { %4042 = vmatprep.subr.bf16.mxu0 %v4417_v12  ;;  %4048 = vmatprep.subr.bf16.mxu1 %v4417_v12 }
 0x448   :  { %v1668_v51 = vpop.f32.mrb[28].mxu0  ;;  %v1741_v53 = vpop.f32.mrb[28].mxu1 }
 0x449   :  { %v1672_v54 = vadd.f32 %v1668_v51, %v1598_v50  ;;  %v1745_v55 = vadd.f32 %v1741_v53, %v1674_v52  ;;  %v3724_v56 = vpop.f32.mrb[29].mxu0  ;;  %v3735_v57 = vpop.f32.mrb[29].mxu1 }
 0x44b   :  { %v3299_v58 = vmul.f32 -1.442695, %v1672_v54  ;;  %v3300_v59 = vmul.f32 -1.442695, %v1745_v55 }
 0x44d   :  { %4187 = vpow2.f32 %v3299_v58 }
 0x44e   :  { %4189 = vpow2.f32 %v3300_v59 }
 0x450   :  { %v1814_v60 = vpop.f32.mrb[30].mxu0  ;;  %v1887_v62 = vpop.f32.mrb[30].mxu1 }
 0x451   :  { %v1891_v63 = vadd.f32 %v1887_v62, %v1820_v61  ;;  %v3746_v0 = vpop.f32.mrb[31].mxu0  ;;  %v3757_v1 = vpop.f32.mrb[31].mxu1  ;;  %v1818_v4 = vadd.f32 %v1814_v60, %v1747_v2  ;;  %v2316_v2 = vld [vmem:[#allocation4 + $0x68] sm:$0xff] }
 0x452   :  { %v2240_v0 = vld [vmem:[#allocation4 + $0x28] sm:$0xff] }
 0x453   :  { %v3301_v3 = vmul.f32 -1.442695, %v1891_v63 }
 0x455   :  { %4191 = vpow2.f32 %v3301_v3 }
 0x456   :  { %4193 = vtanh.f32 %v1818_v4 }
 0x457   :  { %v4188_v5 = vpop.eup %4187 }
 0x458   :  { %v4190_v6 = vpop.eup %4189  ;;  %v1895_v7 = vadd.f32 1.0, %v4188_v5 }
 0x459   :  { %v1901_v8 = vadd.f32 1.0, %v4190_v6 }
 0x45a   :  { %4195 = vrcp.f32 %v1895_v7 }
 0x45b   :  { %4197 = vrcp.f32 %v1901_v8 }
 0x45f   :  { %v4192_v9 = vpop.eup %4191 }
 0x460   :  { %v4194_v10 = vpop.eup %4193  ;;  %v1908_v15 = vadd.f32 1.0, %v4192_v9 }
 0x462   :  { %4199 = vrcp.f32 %v1908_v15 }
 0x464   :  { %v4196_v11 = vpop.eup %4195 }
 0x465   :  { %v4198_v13 = vpop.eup %4197  ;;  %v1912_v14 = vmul.f32 %v4196_v11, %v4194_v10  ;;  %v2462_v11 = vld [vmem:[#allocation4 + $0xe8] sm:$0xff] }
 0x466   :  { %v1911_v16 = vmul.f32 %v4198_v13, %v4729_v46  ;;  %v2068_v46 = vld [vmem:[#allocation4 + $0xa0] sm:$0xff] }
 0x468   :  { %v4762_v17 = vadd.f32 %v1912_v14, %v1911_v16 }
 0x46a   :  { %4201 = vtanh.f32 %v4762_v17 }
 0x46c   :  { %v4200_v20 = vpop.eup %4199 }
 0x474   :  { %v4202_v21 = vpop.eup %4201 }
 0x475   :  { %v1915_v22 = vmul.f32 %v4202_v21, %v4200_v20 }
 0x477   :  { %3767 = vmatmul.mubr.msk.f32.vlgmr.msra.gmra.mrb[32].mxu0 %vm87_vm1, %v1915_v22  ;;  %1917 = vst.msk [vmem:[#allocation13 + $0x18] sm:$0xff] %vm87_vm1, %v1915_v22  ;;  %3778 = vmatmul.mubr.msk.f32.vlgmr.msra.gmra.mrb[32].mxu1 %vm87_vm1, %v1915_v22 }
 0x478   :  { %4044 = vmatpush3.bf16.msra.mxu0 %v4591_v32  ;;  %4050 = vmatpush3.bf16.msra.mxu1 %v4593_v33 }
 0x479   :  { %4045 = vmatprep.subr.bf16.mxu0 %v4417_v12  ;;  %4051 = vmatprep.subr.bf16.mxu1 %v4417_v12 }
 0x47a   :  { %3788 = vmatprep.mubr.msk.f32.mxu0 %vm4418_vm2, %v4419_v30  ;;  %3799 = vmatprep.mubr.msk.f32.mxu1 %vm4418_vm2, %v4419_v30 }
 0x47c   :  { %4047 = vmatpush3.bf16.msra.mxu0 %v4599_v38  ;;  %4053 = vmatpush3.bf16.msra.mxu1 %v4601_v39 }
 0x47d   :  { %4054 = vmatprep.subr.bf16.mxu0 %v4417_v12  ;;  %4060 = vmatprep.subr.bf16.mxu1 %v4417_v12 }
 0x47f   :  { %3789 = vmatmul.mubr.msk.f32.vlgmr.msra.gmra.mrb[34].mxu0 %vm87_vm1, %v1915_v22  ;;  %3800 = vmatmul.mubr.msk.f32.vlgmr.msra.gmra.mrb[34].mxu1 %vm87_vm1, %v1915_v22 }
 0x480   :  { %4056 = vmatpush3.bf16.msra.mxu0 %v4557_v18  ;;  %4062 = vmatpush3.bf16.msra.mxu1 %v4559_v19 }
 0x481   :  { %4057 = vmatprep.subr.bf16.mxu0 %v4417_v12  ;;  %4063 = vmatprep.subr.bf16.mxu1 %v4417_v12 }
 0x482   :  { %3810 = vmatprep.mubr.msk.f32.mxu0 %vm4418_vm2, %v4419_v30  ;;  %3821 = vmatprep.mubr.msk.f32.mxu1 %vm4418_vm2, %v4419_v30 }
 0x484   :  { %4059 = vmatpush3.bf16.msra.mxu0 %v4567_v24  ;;  %4065 = vmatpush3.bf16.msra.mxu1 %v4569_v25 }
 0x485   :  { %4066 = vmatprep.subr.bf16.mxu0 %v4417_v12  ;;  %4072 = vmatprep.subr.bf16.mxu1 %v4417_v12 }
 0x54a   :  { %v1989_v26 = vpop.f32.mrb[32].mxu0  ;;  %v2062_v28 = vpop.f32.mrb[32].mxu1 }
 0x54b   :  { %v1993_v29 = vadd.f32 %v1989_v26, %v1919_v23  ;;  %v2066_v31 = vadd.f32 %v2062_v28, %v1995_v27  ;;  %v3768_v34 = vpop.f32.mrb[33].mxu0  ;;  %v3779_v35 = vpop.f32.mrb[33].mxu1 }
 0x54d   :  { %v3306_v36 = vmul.f32 -1.442695, %v1993_v29  ;;  %v3307_v37 = vmul.f32 -1.442695, %v2066_v31 }
 0x54f   :  { %4203 = vpow2.f32 %v3306_v36 }
 0x550   :  { %4205 = vpow2.f32 %v3307_v37 }
 0x552   :  { %v2135_v40 = vpop.f32.mrb[34].mxu0  ;;  %v2208_v42 = vpop.f32.mrb[34].mxu1 }
 0x553   :  { %v2212_v43 = vadd.f32 %v2208_v42, %v2141_v41  ;;  %v3790_v44 = vpop.f32.mrb[35].mxu0  ;;  %v3801_v45 = vpop.f32.mrb[35].mxu1  ;;  %v2139_v48 = vadd.f32 %v2135_v40, %v2068_v46 }
 0x554   :  { %v2637_v44 = vld [vmem:[#allocation4 + $0x70] sm:$0xff] }
 0x555   :  { %v3308_v47 = vmul.f32 -1.442695, %v2212_v43 }
 0x557   :  { %4207 = vpow2.f32 %v3308_v47 }
 0x558   :  { %4209 = vtanh.f32 %v2139_v48 }
 0x559   :  { %v4204_v49 = vpop.eup %4203 }
 0x55a   :  { %v4206_v50 = vpop.eup %4205  ;;  %v2216_v51 = vadd.f32 1.0, %v4204_v49 }
 0x55b   :  { %v2222_v52 = vadd.f32 1.0, %v4206_v50 }
 0x55c   :  { %4211 = vrcp.f32 %v2216_v51 }
 0x55d   :  { %4213 = vrcp.f32 %v2222_v52 }
 0x561   :  { %v4208_v53 = vpop.eup %4207 }
 0x562   :  { %v4210_v54 = vpop.eup %4209  ;;  %v2229_v58 = vadd.f32 1.0, %v4208_v53 }
 0x564   :  { %4215 = vrcp.f32 %v2229_v58 }
 0x566   :  { %v4212_v55 = vpop.eup %4211 }
 0x567   :  { %v4214_v56 = vpop.eup %4213  ;;  %v2233_v57 = vmul.f32 %v4212_v55, %v4210_v54 }
 0x568   :  { %v2232_v59 = vmul.f32 %v4214_v56, %v4762_v17  ;;  %v2389_v17 = vld [vmem:[#allocation4 + $0xa8] sm:$0xff]  ;;  %v2710_v56 = vld [vmem:[#allocation4 + $0xb0] sm:$0xff] }
 0x56a   :  { %v4795_v60 = vadd.f32 %v2233_v57, %v2232_v59 }
 0x56c   :  { %4217 = vtanh.f32 %v4795_v60 }
 0x56e   :  { %v4216_v61 = vpop.eup %4215 }
 0x576   :  { %v4218_v62 = vpop.eup %4217 }
 0x577   :  { %v2236_v63 = vmul.f32 %v4218_v62, %v4216_v61 }
 0x579   :  { %3811 = vmatmul.mubr.msk.f32.vlgmr.msra.gmra.mrb[36].mxu0 %vm87_vm1, %v2236_v63  ;;  %2238 = vst.msk [vmem:[#allocation13 + $0x20] sm:$0xff] %vm87_vm1, %v2236_v63  ;;  %3822 = vmatmul.mubr.msk.f32.vlgmr.msra.gmra.mrb[36].mxu1 %vm87_vm1, %v2236_v63 }
 0x57a   :  { %4068 = vmatpush3.bf16.msra.mxu0 %v4591_v32  ;;  %4074 = vmatpush3.bf16.msra.mxu1 %v4593_v33 }
 0x57b   :  { %4069 = vmatprep.subr.bf16.mxu0 %v4417_v12  ;;  %4075 = vmatprep.subr.bf16.mxu1 %v4417_v12 }
 0x57c   :  { %3832 = vmatprep.mubr.msk.f32.mxu0 %vm4418_vm2, %v4419_v30  ;;  %3843 = vmatprep.mubr.msk.f32.mxu1 %vm4418_vm2, %v4419_v30 }
 0x57e   :  { %4071 = vmatpush3.bf16.msra.mxu0 %v4599_v38  ;;  %4077 = vmatpush3.bf16.msra.mxu1 %v4601_v39 }
 0x57f   :  { %4078 = vmatprep.subr.bf16.mxu0 %v4417_v12  ;;  %4084 = vmatprep.subr.bf16.mxu1 %v4417_v12 }
 0x581   :  { %3833 = vmatmul.mubr.msk.f32.vlgmr.msra.gmra.mrb[38].mxu0 %vm87_vm1, %v2236_v63  ;;  %3844 = vmatmul.mubr.msk.f32.vlgmr.msra.gmra.mrb[38].mxu1 %vm87_vm1, %v2236_v63 }
 0x582   :  { %4080 = vmatpush3.bf16.msra.mxu0 %v4557_v18  ;;  %4086 = vmatpush3.bf16.msra.mxu1 %v4559_v19 }
 0x583   :  { %4081 = vmatprep.subr.bf16.mxu0 %v4417_v12  ;;  %4087 = vmatprep.subr.bf16.mxu1 %v4417_v12 }
 0x584   :  { %3854 = vmatprep.mubr.msk.f32.mxu0 %vm4418_vm2, %v4419_v30  ;;  %3865 = vmatprep.mubr.msk.f32.mxu1 %vm4418_vm2, %v4419_v30 }
 0x586   :  { %4083 = vmatpush3.bf16.msra.mxu0 %v4567_v24  ;;  %4089 = vmatpush3.bf16.msra.mxu1 %v4569_v25 }
 0x587   :  { %4090 = vmatprep.subr.bf16.mxu0 %v4417_v12  ;;  %4096 = vmatprep.subr.bf16.mxu1 %v4417_v12 }
 0x64c   :  { %v2310_v1 = vpop.f32.mrb[36].mxu0  ;;  %v2383_v3 = vpop.f32.mrb[36].mxu1 }
 0x64d   :  { %v2314_v4 = vadd.f32 %v2310_v1, %v2240_v0  ;;  %v2387_v5 = vadd.f32 %v2383_v3, %v2316_v2  ;;  %v3812_v6 = vpop.f32.mrb[37].mxu0  ;;  %v3823_v7 = vpop.f32.mrb[37].mxu1 }
 0x64f   :  { %v3313_v8 = vmul.f32 -1.442695, %v2314_v4  ;;  %v3314_v9 = vmul.f32 -1.442695, %v2387_v5 }
 0x651   :  { %4219 = vpow2.f32 %v3313_v8 }
 0x652   :  { %4221 = vpow2.f32 %v3314_v9 }
 0x654   :  { %v2456_v10 = vpop.f32.mrb[38].mxu0  ;;  %v2529_v13 = vpop.f32.mrb[38].mxu1 }
 0x655   :  { %v2533_v14 = vadd.f32 %v2529_v13, %v2462_v11  ;;  %v3834_v15 = vpop.f32.mrb[39].mxu0  ;;  %v3845_v16 = vpop.f32.mrb[39].mxu1  ;;  %v2460_v21 = vadd.f32 %v2456_v10, %v2389_v17  ;;  %v2958_v10 = vld [vmem:[#allocation4 + $0x78] sm:$0xff] }
 0x657   :  { %v3315_v20 = vmul.f32 -1.442695, %v2533_v14 }
 0x659   :  { %4223 = vpow2.f32 %v3315_v20 }
 0x65a   :  { %4225 = vtanh.f32 %v2460_v21 }
 0x65b   :  { %v4220_v22 = vpop.eup %4219 }
 0x65c   :  { %v4222_v23 = vpop.eup %4221  ;;  %v2537_v26 = vadd.f32 1.0, %v4220_v22 }
 0x65d   :  { %v2543_v27 = vadd.f32 1.0, %v4222_v23  ;;  %v3031_v23 = vld [vmem:[#allocation4 + $0xb8] sm:$0xff] }
 0x65e   :  { %4227 = vrcp.f32 %v2537_v26 }
 0x65f   :  { %4229 = vrcp.f32 %v2543_v27 }
 0x663   :  { %v4224_v28 = vpop.eup %4223 }
 0x664   :  { %v4226_v29 = vpop.eup %4225  ;;  %v2550_v36 = vadd.f32 1.0, %v4224_v28 }
 0x666   :  { %4231 = vrcp.f32 %v2550_v36 }
 0x668   :  { %v4228_v31 = vpop.eup %4227 }
 0x669   :  { %v4230_v34 = vpop.eup %4229  ;;  %v2554_v35 = vmul.f32 %v4228_v31, %v4226_v29 }
 0x66a   :  { %v2553_v37 = vmul.f32 %v4230_v34, %v4795_v60 }
 0x66c   :  { %v4828_v40 = vadd.f32 %v2554_v35, %v2553_v37 }
 0x66e   :  { %4233 = vtanh.f32 %v4828_v40 }
 0x670   :  { %v4232_v41 = vpop.eup %4231 }
 0x678   :  { %v4234_v42 = vpop.eup %4233 }
 0x679   :  { %v2557_v43 = vmul.f32 %v4234_v42, %v4232_v41 }
 0x67b   :  { %3855 = vmatmul.mubr.msk.f32.vlgmr.msra.gmra.mrb[40].mxu0 %vm87_vm1, %v2557_v43  ;;  %2559 = vst.msk [vmem:[#allocation13 + $0x28] sm:$0xff] %vm87_vm1, %v2557_v43  ;;  %3866 = vmatmul.mubr.msk.f32.vlgmr.msra.gmra.mrb[40].mxu1 %vm87_vm1, %v2557_v43 }
 0x67c   :  { %4092 = vmatpush3.bf16.msra.mxu0 %v4591_v32  ;;  %4098 = vmatpush3.bf16.msra.mxu1 %v4593_v33 }
 0x67d   :  { %4093 = vmatprep.subr.bf16.mxu0 %v4417_v12  ;;  %4099 = vmatprep.subr.bf16.mxu1 %v4417_v12 }
 0x67e   :  { %3876 = vmatprep.mubr.msk.f32.mxu0 %vm4418_vm2, %v4419_v30  ;;  %3887 = vmatprep.mubr.msk.f32.mxu1 %vm4418_vm2, %v4419_v30 }
 0x680   :  { %4095 = vmatpush3.bf16.msra.mxu0 %v4599_v38  ;;  %4101 = vmatpush3.bf16.msra.mxu1 %v4601_v39 }
 0x681   :  { %4102 = vmatprep.subr.bf16.mxu0 %v4417_v12  ;;  %4108 = vmatprep.subr.bf16.mxu1 %v4417_v12 }
 0x683   :  { %3877 = vmatmul.mubr.msk.f32.vlgmr.msra.gmra.mrb[42].mxu0 %vm87_vm1, %v2557_v43  ;;  %3888 = vmatmul.mubr.msk.f32.vlgmr.msra.gmra.mrb[42].mxu1 %vm87_vm1, %v2557_v43 }
 0x684   :  { %4104 = vmatpush3.bf16.msra.mxu0 %v4557_v18  ;;  %4110 = vmatpush3.bf16.msra.mxu1 %v4559_v19  ;;  %v2561_v18 = vld [vmem:[#allocation4 + $0x30] sm:$0xff] }
 0x685   :  { %4105 = vmatprep.subr.bf16.mxu0 %v4417_v12  ;;  %4111 = vmatprep.subr.bf16.mxu1 %v4417_v12 }
 0x686   :  { %3898 = vmatprep.mubr.msk.f32.mxu0 %vm4418_vm2, %v4419_v30  ;;  %3909 = vmatprep.mubr.msk.f32.mxu1 %vm4418_vm2, %v4419_v30 }
 0x688   :  { %4107 = vmatpush3.bf16.msra.mxu0 %v4567_v24  ;;  %4113 = vmatpush3.bf16.msra.mxu1 %v4569_v25  ;;  %v2783_v24 = vld [vmem:[#allocation4 + $0xf0] sm:$0xff] }
 0x689   :  { %4114 = vmatprep.subr.bf16.mxu0 %v4417_v12  ;;  %4120 = vmatprep.subr.bf16.mxu1 %v4417_v12 }
 0x74e   :  { %v2631_v19 = vpop.f32.mrb[40].mxu0  ;;  %v2704_v45 = vpop.f32.mrb[40].mxu1 }
 0x74f   :  { %v2635_v46 = vadd.f32 %v2631_v19, %v2561_v18  ;;  %v2708_v47 = vadd.f32 %v2704_v45, %v2637_v44  ;;  %v3856_v48 = vpop.f32.mrb[41].mxu0  ;;  %v3867_v49 = vpop.f32.mrb[41].mxu1 }
 0x751   :  { %v3320_v50 = vmul.f32 -1.442695, %v2635_v46  ;;  %v3321_v51 = vmul.f32 -1.442695, %v2708_v47 }
 0x753   :  { %4235 = vpow2.f32 %v3320_v50 }
 0x754   :  { %4237 = vpow2.f32 %v3321_v51 }
 0x756   :  { %v2777_v52 = vpop.f32.mrb[42].mxu0  ;;  %v2850_v53 = vpop.f32.mrb[42].mxu1 }
 0x757   :  { %v2854_v25 = vadd.f32 %v2850_v53, %v2783_v24  ;;  %v3878_v54 = vpop.f32.mrb[43].mxu0  ;;  %v3889_v55 = vpop.f32.mrb[43].mxu1  ;;  %v2781_v58 = vadd.f32 %v2777_v52, %v2710_v56 }
 0x759   :  { %v3322_v57 = vmul.f32 -1.442695, %v2854_v25 }
 0x75b   :  { %4239 = vpow2.f32 %v3322_v57 }
 0x75c   :  { %4241 = vtanh.f32 %v2781_v58 }
 0x75d   :  { %v4236_v59 = vpop.eup %4235 }
 0x75e   :  { %v4238_v60 = vpop.eup %4237  ;;  %v2858_v61 = vadd.f32 1.0, %v4236_v59 }
 0x75f   :  { %v2864_v62 = vadd.f32 1.0, %v4238_v60 }
 0x760   :  { %4243 = vrcp.f32 %v2858_v61 }
 0x761   :  { %4245 = vrcp.f32 %v2864_v62 }
 0x765   :  { %v4240_v63 = vpop.eup %4239 }
 0x766   :  { %v4242_v0 = vpop.eup %4241  ;;  %v2871_v4 = vadd.f32 1.0, %v4240_v63 }
 0x768   :  { %4247 = vrcp.f32 %v2871_v4 }
 0x76a   :  { %v4244_v1 = vpop.eup %4243 }
 0x76b   :  { %v4246_v2 = vpop.eup %4245  ;;  %v2875_v3 = vmul.f32 %v4244_v1, %v4242_v0 }
 0x76c   :  { %v2874_v5 = vmul.f32 %v4246_v2, %v4828_v40 }
 0x76e   :  { %v2876_v6 = vadd.f32 %v2875_v3, %v2874_v5 }
 0x770   :  { %4249 = vtanh.f32 %v2876_v6 }
 0x772   :  { %v4248_v7 = vpop.eup %4247 }
 0x77a   :  { %v4250_v8 = vpop.eup %4249 }
 0x77b   :  { %v2878_v9 = vmul.f32 %v4250_v8, %v4248_v7 }
 0x77d   :  { %3899 = vmatmul.mubr.msk.f32.vlgmr.msra.gmra.mrb[44].mxu0 %vm87_vm1, %v2878_v9  ;;  %2880 = vst.msk [vmem:[#allocation13 + $0x30] sm:$0xff] %vm87_vm1, %v2878_v9  ;;  %3910 = vmatmul.mubr.msk.f32.vlgmr.msra.gmra.mrb[44].mxu1 %vm87_vm1, %v2878_v9 }
 0x77e   :  { %4116 = vmatpush3.bf16.msra.mxu0 %v4591_v32  ;;  %4122 = vmatpush3.bf16.msra.mxu1 %v4593_v33  ;;  %v2882_v32 = vld [vmem:[#allocation4 + $0x38] sm:$0xff] }
 0x77f   :  { %4117 = vmatprep.subr.bf16.mxu0 %v4417_v12  ;;  %4123 = vmatprep.subr.bf16.mxu1 %v4417_v12 }
 0x780   :  { %3920 = vmatprep.mubr.msk.f32.mxu0 %vm4418_vm2, %v4419_v30  ;;  %3931 = vmatprep.mubr.msk.f32.mxu1 %vm4418_vm2, %v4419_v30 }
 0x782   :  { %4119 = vmatpush3.bf16.msra.mxu0 %v4599_v38  ;;  %4125 = vmatpush3.bf16.msra.mxu1 %v4601_v39  ;;  %v3104_v38 = vld [vmem:[#allocation4 + $0xf8] sm:$0xff] }
 0x785   :  { %3921 = vmatmul.mubr.msk.f32.vlgmr.msra.gmra.mrb[46].mxu0 %vm87_vm1, %v2878_v9  ;;  %3932 = vmatmul.mubr.msk.f32.vlgmr.msra.gmra.mrb[46].mxu1 %vm87_vm1, %v2878_v9 }
 0x850   :  { %v2952_v33 = vpop.f32.mrb[44].mxu0  ;;  %v3025_v11 = vpop.f32.mrb[44].mxu1 }
 0x851   :  { %v2956_v13 = vadd.f32 %v2952_v33, %v2882_v32  ;;  %v3029_v12 = vadd.f32 %v3025_v11, %v2958_v10  ;;  %v3900_v14 = vpop.f32.mrb[45].mxu0  ;;  %v3911_v15 = vpop.f32.mrb[45].mxu1 }
 0x853   :  { %v3327_v16 = vmul.f32 -1.442695, %v2956_v13  ;;  %v3328_v17 = vmul.f32 -1.442695, %v3029_v12 }
 0x855   :  { %4251 = vpow2.f32 %v3327_v16 }
 0x856   :  { %4253 = vpow2.f32 %v3328_v17 }
 0x858   :  { %v3098_v30 = vpop.f32.mrb[46].mxu0  ;;  %v3171_v20 = vpop.f32.mrb[46].mxu1 }
 0x859   :  { %v3175_v39 = vadd.f32 %v3171_v20, %v3104_v38  ;;  %v3922_v21 = vpop.f32.mrb[47].mxu0  ;;  %v3933_v22 = vpop.f32.mrb[47].mxu1  ;;  %v3102_v27 = vadd.f32 %v3098_v30, %v3031_v23 }
 0x85b   :  { %v3329_v26 = vmul.f32 -1.442695, %v3175_v39 }
 0x85d   :  { %4255 = vpow2.f32 %v3329_v26 }
 0x85e   :  { %4257 = vtanh.f32 %v3102_v27 }
 0x85f   :  { %v4252_v28 = vpop.eup %4251 }
 0x860   :  { %v4254_v29 = vpop.eup %4253  ;;  %v3179_v31 = vadd.f32 1.0, %v4252_v28 }
 0x861   :  { %v3185_v34 = vadd.f32 1.0, %v4254_v29 }
 0x862   :  { %4259 = vrcp.f32 %v3179_v31 }
 0x863   :  { %4261 = vrcp.f32 %v3185_v34 }
 0x867   :  { %v4256_v35 = vpop.eup %4255 }
 0x868   :  { %v4258_v36 = vpop.eup %4257  ;;  %v3192_v42 = vadd.f32 1.0, %v4256_v35 }
 0x86a   :  { %4263 = vrcp.f32 %v3192_v42 }
 0x86c   :  { %v4260_v37 = vpop.eup %4259 }
 0x86d   :  { %v4262_v40 = vpop.eup %4261  ;;  %v3196_v41 = vmul.f32 %v4260_v37, %v4258_v36 }
 0x86e   :  { %v3195_v43 = vmul.f32 %v4262_v40, %v2876_v6 }
 0x870   :  { %v3197_v18 = vadd.f32 %v3196_v41, %v3195_v43 }
 0x872   :  { %4265 = vtanh.f32 %v3197_v18  ;;  %3203 = vst.msk [vmem:[#allocation3] sm:$0xff] %vm87_vm1, %v3197_v18  ;;  %3204 = vst.msk [vmem:[#allocation14] sm:$0xff] %vm87_vm1, %v3197_v18 }
 0x873   :  { %4366 = shalt.err (!%p4363_p8)
}
 0x874   :  { %s4367_s12 = scalar_lea.hbm %s4914_s7, 128 }
 0x875   :  { %p4368_p9 = scmp.ne.s32.totalorder %s4914_s7, %s4367_s12  ;;  %p4371_p10 = scmp.lt.u32.totalorder %s4367_s12, %s4914_s7 }
 0x877   :  { %p4373_p11 = pnand %p4371_p10, %p4368_p9 }
 0x879   :  { %4376 = shalt.err (!%p4373_p11)
}
 0x87a   :  { %3226 = dma.vmem_to_hbm [thread:$0]  %s3224_s8, 128, %s4914_s7, [#allocation15]   ;;  %v4264_v19 = vpop.eup %4263 }
 0x87b   :  { %s4421_s19 = smov [#allocation13]  }
 0x87c   :  { %s3210_s20 = sshll.u32 %s4421_s19, 4  ;;  %v4266_v44 = vpop.eup %4265  ;;  %s3211_s20 = int_to_ptr.vmem [resolvable:$true] %s3210_s20 }
 0x87d   :  { %v3199_v45 = vmul.f32 %v4266_v44, %v4264_v19  ;;  %s4377_s21 = scalar_lea.vmem %s3211_s20, 1024  ;;  %p4382_p13 = scmp.lt.s32.totalorder %s3211_s20, %s3211_s20 }
 0x87e   :  { %p4378_p12 = scmp.ne.s32.totalorder %s3211_s20, %s4377_s21  ;;  %p4383_p0 = scmp.lt.s32.totalorder %s4377_s21, %s4377_s21 }
 0x87f   :  { %3201 = vst.msk [vmem:[#allocation13 + $0x38] sm:$0xff] %vm87_vm1, %v3199_v45  ;;  %3202 = vst.msk [vmem:[#allocation2] sm:$0xff] %vm87_vm1, %v3199_v45 }
 0x880   :  { %p4384_p1 = por %p4383_p0, %p4382_p13 }
 0x882   :  { %p4385_p2 = pnand %p4384_p1, %p4378_p12 }
 0x884   :  { %4388 = shalt.err (!%p4385_p2)
}
 0x885   :  { %s4389_s7 = scalar_lea.hbm %s4913_s6, 1024 }
 0x886   :  { %p4390_p3 = scmp.ne.s32.totalorder %s4913_s6, %s4389_s7  ;;  %p4393_p4 = scmp.lt.u32.totalorder %s4389_s7, %s4913_s6 }
 0x888   :  { %p4395_p5 = pnand %p4393_p4, %p4390_p3 }
 0x88a   :  { %4398 = shalt.err (!%p4395_p5)
}
 0x88b   :  { %3216 = dma.vmem_to_hbm [thread:$0]  %s3211_s20, 1024, %s4913_s6, [#allocation7], %s4411_s13, %s4411_s13, %s4412_s14  }
 0x88c   :  { %4405 = dma.done.wait [#allocation7], 1024  }
 0x88d   :  { %4406 = vsyncadd [#allocation7], 4294966272 }
 0x88e   :  { %4407 = dma.done.wait [#allocation15], 128  }
 0x88f   :  { %4408 = vsyncadd [#allocation15], 4294967168 }
 0x890   :  { %3233 = vsyncpa [#allocation6], 1 }
 0x891   :  { %3234 = vsyncpa [#allocation9], 1 }
 0x892   :  { %3235 = vsyncpa [#allocation12], 1 }
 0x893   :  { %3236 = vsyncpa [#allocation7], 1 }
 0x894   :  { %3237 = vsyncpa [#allocation15], 1 }

</bundles_post_ra>
